<compile_context>
chip_gen: v6e
topology: v6e:2x2x1
jax: 0.10.0
libtpu: 0.0.40
codegen_flags: <defaults>
</compile_context>

<pallas_src>
import functools

import jax
import jax.numpy as jnp
from jax import lax
from jax.experimental import pallas as pl
from jax.experimental.pallas import tpu as pltpu


# --------------------------- bilinear (align_corners=True) helpers ---------------------------

def _bilinear_matrix(out_size: int, in_size: int, dtype=jnp.float32):
    """Interpolation matrix M (out_size, in_size): out = M @ in, align_corners=True."""
    if out_size == 1:
        pos = jnp.zeros((1,), dtype)
    else:
        pos = jnp.arange(out_size, dtype=dtype) * ((in_size - 1) / (out_size - 1))
    i0 = jnp.clip(jnp.floor(pos).astype(jnp.int32), 0, in_size - 1)
    i1 = jnp.clip(i0 + 1, 0, in_size - 1)
    w1 = pos - i0.astype(dtype)
    w0 = 1.0 - w1
    return (jax.nn.one_hot(i0, in_size, dtype=dtype) * w0[:, None]
            + jax.nn.one_hot(i1, in_size, dtype=dtype) * w1[:, None])


def _bilinear_row_tables(out_size: int, in_size: int, pad: int):
    """Per padded output row: two source-row indices + weights (align_corners=True).

    The `pad` extra rows at each end (the dilated conv's zero padding) get w0 = w1 = 0.
    """
    if out_size == 1:
        pos = jnp.zeros((1,), jnp.float32)
    else:
        pos = jnp.arange(out_size, dtype=jnp.float32) * ((in_size - 1) / (out_size - 1))
    i0 = jnp.clip(jnp.floor(pos).astype(jnp.int32), 0, in_size - 1)
    i1 = jnp.clip(i0 + 1, 0, in_size - 1)
    w1 = pos - i0.astype(jnp.float32)
    w0 = 1.0 - w1
    zi = jnp.zeros((pad,), jnp.int32)
    zw = jnp.zeros((pad,), jnp.float32)
    idx0 = jnp.concatenate([zi, i0, zi])
    idx1 = jnp.concatenate([zi, i1, zi])
    wt0 = jnp.concatenate([zw, w0, zw])
    wt1 = jnp.concatenate([zw, w1, zw])
    return idx0, idx1, wt0, wt1


def _upsample_bilinear_nchw(x, out_h, out_w):
    mh = _bilinear_matrix(out_h, x.shape[2])
    mw = _bilinear_matrix(out_w, x.shape[3])
    return jnp.einsum('ncij,hi,wj->nchw', x.astype(jnp.float32), mh, mw)


# ------------------------------------- Pallas kernel ------------------------------------------

def _ccf_kernel(low_ref, high_ref, idx0_ref, idx1_ref, w0_ref, w1_ref,
                wl_ref, wh_ref, bias_ref, out_ref, up_ref, *, TH, W):
    # low_ref : (H_low, W+4, Cl)   W-interpolated + width-padded low branch (whole image)
    # high_ref: (TH, W, Ch)        high-branch tile
    # idx*/w* : (H+4,) in SMEM     2-tap H-interpolation tables (padding rows have w=0)
    # wl_ref  : (9, Cl, Cout)      BN-folded dilated-3x3 taps, row-major over (ky, kx)
    # wh_ref  : (Ch, Cout)         BN-folded 1x1 conv
    # bias_ref: (1, Cout) f32      merged BN bias (low + high)
    # up_ref  : (TH+4, W+4, Cl)    VMEM scratch: H-interpolated + fully padded tile (+halo)
    t = pl.program_id(1)
    base = t * TH

    # ---- fused bilinear H-interpolation (+ zero-pad rows + dilated-conv row halo) ----
    for r in range(TH + 4):
        g = base + r                       # row index into the padded high-res grid
        i0 = idx0_ref[g]
        i1 = idx1_ref[g]
        w0 = w0_ref[g]
        w1 = w1_ref[g]
        row = low_ref[i0] * w0 + low_ref[i1] * w1        # (W+4, Cl) in f32
        up_ref[r] = row.astype(up_ref.dtype)

    up = up_ref[...]                                     # (TH+4, W+4, Cl)

    # ---- 3x3 dilation-2 conv (BN folded into wl); acc initialized from the first tap ----
    acc = None
    for ky in range(3):
        slab = up[2 * ky: 2 * ky + TH]                   # (TH, W+4, Cl)
        for kx in range(3):
            # NOTE: sublane offsets 2/4 are not 8-aligned; pltpu.roll could move the shift
            # to the XLU — kept as plain slices for lowering robustness.
            tap = slab[:, 2 * kx: 2 * kx + W, :]         # (TH, W, Cl)
            part = jnp.einsum('hwc,co->hwo', tap, wl_ref[ky * 3 + kx],
                              preferred_element_type=jnp.float32)
            acc = part if acc is None else acc + part

    # ---- 1x1 conv on the high branch (BN folded) + merged bias + ReLU ----
    acc = acc + jnp.einsum('hwc,co->hwo', high_ref[...], wh_ref[...],
                           preferred_element_type=jnp.float32)
    out_ref[...] = jnp.maximum(acc + bias_ref[...], 0.0).astype(out_ref.dtype)


def cascade_feat_fusion(input_low_nchw, input_high_nchw, params, *,
                        compute_dtype=jnp.bfloat16, tile_h=8):
    """Eval-mode forward of CascadeFeatFusion. Inputs NCHW; output NCHW (f32)."""
    N, Ch, H, W = input_high_nchw.shape
    _, Cl, H_low, W_low = input_low_nchw.shape
    w_low, w_high = params['w_low'], params['w_high']      # (Cout,Cl,3,3), (Cout,Ch,1,1)
    Cout = w_low.shape[0]

    TH = min(tile_h, H)
    assert H % TH == 0, (H, TH)
    nT = H // TH

    # --- glue (kept minimal): W-direction bilinear interp at LOW resolution, emitting NHWC
    #     and the conv's width zero-padding in a single einsum. ---
    mw_pad = jnp.pad(_bilinear_matrix(W, W_low), ((2, 2), (0, 0)))           # (W+4, W_low)
    low_w = jnp.einsum('ncij,wj->niwc', input_low_nchw.astype(jnp.float32),
                       mw_pad).astype(compute_dtype)                         # (N,H_low,W+4,Cl)
    high_nhwc = jnp.transpose(input_high_nchw, (0, 2, 3, 1)).astype(compute_dtype)

    # --- H-direction 2-tap interpolation tables (conv height padding folded in as w=0 rows) ---
    idx0, idx1, wt0, wt1 = _bilinear_row_tables(H, H_low, pad=2)             # each (H+4,)

    # --- fold eval-mode BatchNorm into the conv weights; single merged bias ---
    eps = 1e-5
    sl = params['bn_low_gamma'] / jnp.sqrt(params['bn_low_var'] + eps)       # (Cout,)
    sh = params['bn_high_gamma'] / jnp.sqrt(params['bn_high_var'] + eps)
    bias = (params['bn_low_beta'] - params['bn_low_mean'] * sl
            + params['bn_high_beta'] - params['bn_high_mean'] * sh)
    wl = (jnp.transpose(w_low, (2, 3, 1, 0)).reshape(9, Cl, Cout)
          * sl).astype(compute_dtype)                                        # (9, Cl, Cout)
    wh = (w_high[:, :, 0, 0].T * sh).astype(compute_dtype)                   # (Ch, Cout)
    bias = bias.reshape(1, Cout).astype(jnp.float32)

    kernel = functools.partial(_ccf_kernel, TH=TH, W=W)
    smem_spec = pl.BlockSpec(memory_space=pltpu.MemorySpace.SMEM)

    out_nhwc = pl.pallas_call(
        kernel,
        out_shape=jax.ShapeDtypeStruct((N, H, W, Cout), jnp.float32),
        grid=(N, nT),
        in_specs=[
            pl.BlockSpec((None, H_low, W + 4, Cl), lambda n, t: (n, 0, 0, 0)),
            pl.BlockSpec((None, TH, W, Ch), lambda n, t: (n, t, 0, 0)),
            smem_spec, smem_spec, smem_spec, smem_spec,
            pl.BlockSpec((9, Cl, Cout), lambda n, t: (0, 0, 0)),
            pl.BlockSpec((Ch, Cout), lambda n, t: (0, 0)),
            pl.BlockSpec((1, Cout), lambda n, t: (0, 0)),
        ],
        out_specs=pl.BlockSpec((None, TH, W, Cout), lambda n, t: (n, t, 0, 0)),
        scratch_shapes=[pltpu.VMEM((TH + 4, W + 4, Cl), compute_dtype)],
        compiler_params=pltpu.CompilerParams(
            dimension_semantics=("parallel", "parallel"),
            vmem_limit_bytes=32 * 1024 * 1024),
    )(low_w, high_nhwc, idx0, idx1, wt0, wt1, wl, wh, bias)

    return jnp.transpose(out_nhwc, (0, 3, 1, 2))                             # back to NCHW


# ----------------------------------- pure-JAX reference --------------------------------------

def cascade_feat_fusion_ref(input_low, input_high, params):
    N, Ch, H, W = input_high.shape
    eps = 1e-5
    low_up = _upsample_bilinear_nchw(input_low, H, W)
    x_low = lax.conv_general_dilated(
        low_up, params['w_low'], window_strides=(1, 1), padding=((2, 2), (2, 2)),
        rhs_dilation=(2, 2), dimension_numbers=('NCHW', 'OIHW', 'NCHW'))
    sl = params['bn_low_gamma'] / jnp.sqrt(params['bn_low_var'] + eps)
    x_low = x_low * sl[None, :, None, None] + (
        params['bn_low_beta'] - params['bn_low_mean'] * sl)[None, :, None, None]
    x_high = lax.conv_general_dilated(
        input_high.astype(jnp.float32), params['w_high'], window_strides=(1, 1),
        padding='VALID', dimension_numbers=('NCHW', 'OIHW', 'NCHW'))
    sh = params['bn_high_gamma'] / jnp.sqrt(params['bn_high_var'] + eps)
    x_high = x_high * sh[None, :, None, None] + (
        params['bn_high_beta'] - params['bn_high_mean'] * sh)[None, :, None, None]
    return jnp.maximum(x_low + x_high, 0.0)


# ---------------------------------------------- main -----------------------------------------

if __name__ == "__main__":
    key = jax.random.PRNGKey(0)
    N = 2
    low_channels, high_channels, out_channels, num_classes = 4, 6, 8, 5
    H_low, W_low, H_high, W_high = 8, 8, 16, 16

    ks = jax.random.split(key, 12)
    input_low = jax.random.normal(ks[0], (N, low_channels, H_low, W_low), jnp.float32)
    input_high = jax.random.normal(ks[1], (N, high_channels, H_high, W_high), jnp.float32)

    params = {
        'w_low': jax.random.normal(ks[2], (out_channels, low_channels, 3, 3), jnp.float32) * 0.1,
        'w_high': jax.random.normal(ks[3], (out_channels, high_channels, 1, 1), jnp.float32) * 0.1,
        'bn_low_gamma': 1.0 + 0.1 * jax.random.normal(ks[4], (out_channels,), jnp.float32),
        'bn_low_beta': 0.1 * jax.random.normal(ks[5], (out_channels,), jnp.float32),
        'bn_low_mean': 0.1 * jax.random.normal(ks[6], (out_channels,), jnp.float32),
        'bn_low_var': jnp.abs(1.0 + 0.1 * jax.random.normal(ks[7], (out_channels,), jnp.float32)),
        'bn_high_gamma': 1.0 + 0.1 * jax.random.normal(ks[8], (out_channels,), jnp.float32),
        'bn_high_beta': 0.1 * jax.random.normal(ks[9], (out_channels,), jnp.float32),
        'bn_high_mean': 0.1 * jax.random.normal(ks[10], (out_channels,), jnp.float32),
        'bn_high_var': jnp.abs(1.0 + 0.1 * jax.random.normal(ks[11], (out_channels,), jnp.float32)),
        # conv_low_cls weights would be (num_classes, out_channels, 1, 1): unused in eval mode.
    }

    ref = cascade_feat_fusion_ref(input_low, input_high, params)

    # f32 path: tight algorithmic check against the pure-JAX reference.
    out_f32 = cascade_feat_fusion(input_low, input_high, params,
                                  compute_dtype=jnp.float32, tile_h=8)
    jax.block_until_ready(out_f32)
    assert out_f32.shape == (N, out_channels, H_high, W_high), out_f32.shape
    assert jnp.allclose(out_f32, ref, atol=1e-3, rtol=1e-3), \
        float(jnp.max(jnp.abs(out_f32 - ref)))

    # bf16 path (default performance configuration): loose tolerance for low-precision
    # inputs/weights; algorithmic correctness is established by the f32 check above.
    out_bf16 = cascade_feat_fusion(input_low, input_high, params, tile_h=8)
    jax.block_until_ready(out_bf16)
    assert out_bf16.shape == (N, out_channels, H_high, W_high), out_bf16.shape
    assert jnp.allclose(out_bf16, ref, atol=1e-1, rtol=5e-2), \
        float(jnp.max(jnp.abs(out_bf16 - ref)))

    print("KERNEL_OK")
</pallas_src>

<mosaic_0001>
module attributes {stable_mosaic.version = 11 : i64} {
  func.func @_ccf_kernel(%arg0: i32, %arg1: i32, %arg2: memref<1x8x20x4xf32, #tpu.memory_space<vmem>>, %arg3: memref<1x8x16x6xf32, #tpu.memory_space<vmem>>, %arg4: memref<20xi32, #tpu.memory_space<smem>>, %arg5: memref<20xi32, #tpu.memory_space<smem>>, %arg6: memref<20xf32, #tpu.memory_space<smem>>, %arg7: memref<20xf32, #tpu.memory_space<smem>>, %arg8: memref<9x4x8xf32, #tpu.memory_space<vmem>>, %arg9: memref<6x8xf32, #tpu.memory_space<vmem>>, %arg10: memref<1x8xf32, #tpu.memory_space<vmem>>, %arg11: memref<1x8x16x8xf32, #tpu.memory_space<vmem>>, %arg12: memref<12x20x4xf32, #tpu.memory_space<vmem>>) attributes {dimension_semantics = [#tpu.dimension_semantics<parallel>, #tpu.dimension_semantics<parallel>], iteration_bounds = array<i64: 2, 2>, scalar_prefetch = 0 : i64, scratch_operands = 1 : i64, tpu.core_type = #tpu.core_type<tc>, window_params = [{transform_indices = @transform_0, window_bounds = array<i64: 1, 8, 20, 4>}, {transform_indices = @transform_1, window_bounds = array<i64: 1, 8, 16, 6>}, {transform_indices = @transform_2, window_bounds = array<i64: 20>}, {transform_indices = @transform_3, window_bounds = array<i64: 20>}, {transform_indices = @transform_4, window_bounds = array<i64: 20>}, {transform_indices = @transform_5, window_bounds = array<i64: 20>}, {pipeline_mode = #tpu.pipeline_mode<synchronous>, transform_indices = @transform_6, window_bounds = array<i64: 9, 4, 8>}, {pipeline_mode = #tpu.pipeline_mode<synchronous>, transform_indices = @transform_7, window_bounds = array<i64: 6, 8>}, {pipeline_mode = #tpu.pipeline_mode<synchronous>, transform_indices = @transform_8, window_bounds = array<i64: 1, 8>}, {transform_indices = @transform_9, window_bounds = array<i64: 1, 8, 16, 8>}]} {
    %c8_i32 = arith.constant 8 : i32
    %0 = arith.muli %arg1, %c8_i32 : i32
    %c0_i32 = arith.constant 0 : i32
    %1 = arith.addi %0, %c0_i32 : i32
    %2 = arith.index_cast %1 : i32 to index
    %3 = memref.load %arg4[%2] : memref<20xi32, #tpu.memory_space<smem>>
    %4 = arith.index_cast %1 : i32 to index
    %5 = memref.load %arg5[%4] : memref<20xi32, #tpu.memory_space<smem>>
    %6 = arith.index_cast %1 : i32 to index
    %7 = memref.load %arg6[%6] : memref<20xf32, #tpu.memory_space<smem>>
    %8 = arith.index_cast %1 : i32 to index
    %9 = memref.load %arg7[%8] : memref<20xf32, #tpu.memory_space<smem>>
    %c0 = arith.constant 0 : index
    %10 = arith.index_cast %3 : i32 to index
    %c0_0 = arith.constant 0 : index
    %c0_1 = arith.constant 0 : index
    %11 = vector.load %arg2[%c0, %10, %c0_0, %c0_1] : memref<1x8x20x4xf32, #tpu.memory_space<vmem>>, vector<1x1x20x4xf32>
    %12 = vector.shape_cast %11 : vector<1x1x20x4xf32> to vector<20x4xf32>
    %13 = vector.broadcast %7 : f32 to vector<20x4xf32>
    %14 = arith.mulf %12, %13 : vector<20x4xf32>
    %c0_2 = arith.constant 0 : index
    %15 = arith.index_cast %5 : i32 to index
    %c0_3 = arith.constant 0 : index
    %c0_4 = arith.constant 0 : index
    %16 = vector.load %arg2[%c0_2, %15, %c0_3, %c0_4] : memref<1x8x20x4xf32, #tpu.memory_space<vmem>>, vector<1x1x20x4xf32>
    %17 = vector.shape_cast %16 : vector<1x1x20x4xf32> to vector<20x4xf32>
    %18 = vector.broadcast %9 : f32 to vector<20x4xf32>
    %19 = arith.mulf %17, %18 : vector<20x4xf32>
    %20 = arith.addf %14, %19 : vector<20x4xf32>
    %c0_5 = arith.constant 0 : index
    %c0_6 = arith.constant 0 : index
    %c0_7 = arith.constant 0 : index
    %21 = vector.load %arg12[%c0_5, %c0_6, %c0_7] : memref<12x20x4xf32, #tpu.memory_space<vmem>>, vector<1x20x4xf32>
    %22 = vector.shape_cast %21 : vector<1x20x4xf32> to vector<20x4xf32>
    %23 = vector.shape_cast %20 : vector<20x4xf32> to vector<1x20x4xf32>
    tpu.vector_store %arg12[%c0_5, %c0_6, %c0_7], %23 {strides = array<i32>} : memref<12x20x4xf32, #tpu.memory_space<vmem>>, vector<1x20x4xf32>,
    %c1_i32 = arith.constant 1 : i32
    %24 = arith.addi %0, %c1_i32 : i32
    %25 = arith.index_cast %24 : i32 to index
    %26 = memref.load %arg4[%25] : memref<20xi32, #tpu.memory_space<smem>>
    %27 = arith.index_cast %24 : i32 to index
    %28 = memref.load %arg5[%27] : memref<20xi32, #tpu.memory_space<smem>>
    %29 = arith.index_cast %24 : i32 to index
    %30 = memref.load %arg6[%29] : memref<20xf32, #tpu.memory_space<smem>>
    %31 = arith.index_cast %24 : i32 to index
    %32 = memref.load %arg7[%31] : memref<20xf32, #tpu.memory_space<smem>>
    %c0_8 = arith.constant 0 : index
    %33 = arith.index_cast %26 : i32 to index
    %c0_9 = arith.constant 0 : index
    %c0_10 = arith.constant 0 : index
    %34 = vector.load %arg2[%c0_8, %33, %c0_9, %c0_10] : memref<1x8x20x4xf32, #tpu.memory_space<vmem>>, vector<1x1x20x4xf32>
    %35 = vector.shape_cast %34 : vector<1x1x20x4xf32> to vector<20x4xf32>
    %36 = vector.broadcast %30 : f32 to vector<20x4xf32>
    %37 = arith.mulf %35, %36 : vector<20x4xf32>
    %c0_11 = arith.constant 0 : index
    %38 = arith.index_cast %28 : i32 to index
    %c0_12 = arith.constant 0 : index
    %c0_13 = arith.constant 0 : index
    %39 = vector.load %arg2[%c0_11, %38, %c0_12, %c0_13] : memref<1x8x20x4xf32, #tpu.memory_space<vmem>>, vector<1x1x20x4xf32>
    %40 = vector.shape_cast %39 : vector<1x1x20x4xf32> to vector<20x4xf32>
    %41 = vector.broadcast %32 : f32 to vector<20x4xf32>
    %42 = arith.mulf %40, %41 : vector<20x4xf32>
    %43 = arith.addf %37, %42 : vector<20x4xf32>
    %c1 = arith.constant 1 : index
    %c0_14 = arith.constant 0 : index
    %c0_15 = arith.constant 0 : index
    %44 = vector.load %arg12[%c1, %c0_14, %c0_15] : memref<12x20x4xf32, #tpu.memory_space<vmem>>, vector<1x20x4xf32>
    %45 = vector.shape_cast %44 : vector<1x20x4xf32> to vector<20x4xf32>
    %46 = vector.shape_cast %43 : vector<20x4xf32> to vector<1x20x4xf32>
    tpu.vector_store %arg12[%c1, %c0_14, %c0_15], %46 {strides = array<i32>} : memref<12x20x4xf32, #tpu.memory_space<vmem>>, vector<1x20x4xf32>,
    %c2_i32 = arith.constant 2 : i32
    %47 = arith.addi %0, %c2_i32 : i32
    %48 = arith.index_cast %47 : i32 to index
    %49 = memref.load %arg4[%48] : memref<20xi32, #tpu.memory_space<smem>>
    %50 = arith.index_cast %47 : i32 to index
    %51 = memref.load %arg5[%50] : memref<20xi32, #tpu.memory_space<smem>>
    %52 = arith.index_cast %47 : i32 to index
    %53 = memref.load %arg6[%52] : memref<20xf32, #tpu.memory_space<smem>>
    %54 = arith.index_cast %47 : i32 to index
    %55 = memref.load %arg7[%54] : memref<20xf32, #tpu.memory_space<smem>>
    %c0_16 = arith.constant 0 : index
    %56 = arith.index_cast %49 : i32 to index
    %c0_17 = arith.constant 0 : index
    %c0_18 = arith.constant 0 : index
    %57 = vector.load %arg2[%c0_16, %56, %c0_17, %c0_18] : memref<1x8x20x4xf32, #tpu.memory_space<vmem>>, vector<1x1x20x4xf32>
    %58 = vector.shape_cast %57 : vector<1x1x20x4xf32> to vector<20x4xf32>
    %59 = vector.broadcast %53 : f32 to vector<20x4xf32>
    %60 = arith.mulf %58, %59 : vector<20x4xf32>
    %c0_19 = arith.constant 0 : index
    %61 = arith.index_cast %51 : i32 to index
    %c0_20 = arith.constant 0 : index
    %c0_21 = arith.constant 0 : index
    %62 = vector.load %arg2[%c0_19, %61, %c0_20, %c0_21] : memref<1x8x20x4xf32, #tpu.memory_space<vmem>>, vector<1x1x20x4xf32>
    %63 = vector.shape_cast %62 : vector<1x1x20x4xf32> to vector<20x4xf32>
    %64 = vector.broadcast %55 : f32 to vector<20x4xf32>
    %65 = arith.mulf %63, %64 : vector<20x4xf32>
    %66 = arith.addf %60, %65 : vector<20x4xf32>
    %c2 = arith.constant 2 : index
    %c0_22 = arith.constant 0 : index
    %c0_23 = arith.constant 0 : index
    %67 = vector.load %arg12[%c2, %c0_22, %c0_23] : memref<12x20x4xf32, #tpu.memory_space<vmem>>, vector<1x20x4xf32>
    %68 = vector.shape_cast %67 : vector<1x20x4xf32> to vector<20x4xf32>
    %69 = vector.shape_cast %66 : vector<20x4xf32> to vector<1x20x4xf32>
    tpu.vector_store %arg12[%c2, %c0_22, %c0_23], %69 {strides = array<i32>} : memref<12x20x4xf32, #tpu.memory_space<vmem>>, vector<1x20x4xf32>,
    %c3_i32 = arith.constant 3 : i32
    %70 = arith.addi %0, %c3_i32 : i32
    %71 = arith.index_cast %70 : i32 to index
    %72 = memref.load %arg4[%71] : memref<20xi32, #tpu.memory_space<smem>>
    %73 = arith.index_cast %70 : i32 to index
    %74 = memref.load %arg5[%73] : memref<20xi32, #tpu.memory_space<smem>>
    %75 = arith.index_cast %70 : i32 to index
    %76 = memref.load %arg6[%75] : memref<20xf32, #tpu.memory_space<smem>>
    %77 = arith.index_cast %70 : i32 to index
    %78 = memref.load %arg7[%77] : memref<20xf32, #tpu.memory_space<smem>>
    %c0_24 = arith.constant 0 : index
    %79 = arith.index_cast %72 : i32 to index
    %c0_25 = arith.constant 0 : index
    %c0_26 = arith.constant 0 : index
    %80 = vector.load %arg2[%c0_24, %79, %c0_25, %c0_26] : memref<1x8x20x4xf32, #tpu.memory_space<vmem>>, vector<1x1x20x4xf32>
    %81 = vector.shape_cast %80 : vector<1x1x20x4xf32> to vector<20x4xf32>
    %82 = vector.broadcast %76 : f32 to vector<20x4xf32>
    %83 = arith.mulf %81, %82 : vector<20x4xf32>
    %c0_27 = arith.constant 0 : index
    %84 = arith.index_cast %74 : i32 to index
    %c0_28 = arith.constant 0 : index
    %c0_29 = arith.constant 0 : index
    %85 = vector.load %arg2[%c0_27, %84, %c0_28, %c0_29] : memref<1x8x20x4xf32, #tpu.memory_space<vmem>>, vector<1x1x20x4xf32>
    %86 = vector.shape_cast %85 : vector<1x1x20x4xf32> to vector<20x4xf32>
    %87 = vector.broadcast %78 : f32 to vector<20x4xf32>
    %88 = arith.mulf %86, %87 : vector<20x4xf32>
    %89 = arith.addf %83, %88 : vector<20x4xf32>
    %c3 = arith.constant 3 : index
    %c0_30 = arith.constant 0 : index
    %c0_31 = arith.constant 0 : index
    %90 = vector.load %arg12[%c3, %c0_30, %c0_31] : memref<12x20x4xf32, #tpu.memory_space<vmem>>, vector<1x20x4xf32>
    %91 = vector.shape_cast %90 : vector<1x20x4xf32> to vector<20x4xf32>
    %92 = vector.shape_cast %89 : vector<20x4xf32> to vector<1x20x4xf32>
    tpu.vector_store %arg12[%c3, %c0_30, %c0_31], %92 {strides = array<i32>} : memref<12x20x4xf32, #tpu.memory_space<vmem>>, vector<1x20x4xf32>,
    %c4_i32 = arith.constant 4 : i32
    %93 = arith.addi %0, %c4_i32 : i32
    %94 = arith.index_cast %93 : i32 to index
    %95 = memref.load %arg4[%94] : memref<20xi32, #tpu.memory_space<smem>>
    %96 = arith.index_cast %93 : i32 to index
    %97 = memref.load %arg5[%96] : memref<20xi32, #tpu.memory_space<smem>>
    %98 = arith.index_cast %93 : i32 to index
    %99 = memref.load %arg6[%98] : memref<20xf32, #tpu.memory_space<smem>>
    %100 = arith.index_cast %93 : i32 to index
    %101 = memref.load %arg7[%100] : memref<20xf32, #tpu.memory_space<smem>>
    %c0_32 = arith.constant 0 : index
    %102 = arith.index_cast %95 : i32 to index
    %c0_33 = arith.constant 0 : index
    %c0_34 = arith.constant 0 : index
    %103 = vector.load %arg2[%c0_32, %102, %c0_33, %c0_34] : memref<1x8x20x4xf32, #tpu.memory_space<vmem>>, vector<1x1x20x4xf32>
    %104 = vector.shape_cast %103 : vector<1x1x20x4xf32> to vector<20x4xf32>
    %105 = vector.broadcast %99 : f32 to vector<20x4xf32>
    %106 = arith.mulf %104, %105 : vector<20x4xf32>
    %c0_35 = arith.constant 0 : index
    %107 = arith.index_cast %97 : i32 to index
    %c0_36 = arith.constant 0 : index
    %c0_37 = arith.constant 0 : index
    %108 = vector.load %arg2[%c0_35, %107, %c0_36, %c0_37] : memref<1x8x20x4xf32, #tpu.memory_space<vmem>>, vector<1x1x20x4xf32>
    %109 = vector.shape_cast %108 : vector<1x1x20x4xf32> to vector<20x4xf32>
    %110 = vector.broadcast %101 : f32 to vector<20x4xf32>
    %111 = arith.mulf %109, %110 : vector<20x4xf32>
    %112 = arith.addf %106, %111 : vector<20x4xf32>
    %c4 = arith.constant 4 : index
    %c0_38 = arith.constant 0 : index
    %c0_39 = arith.constant 0 : index
    %113 = vector.load %arg12[%c4, %c0_38, %c0_39] : memref<12x20x4xf32, #tpu.memory_space<vmem>>, vector<1x20x4xf32>
    %114 = vector.shape_cast %113 : vector<1x20x4xf32> to vector<20x4xf32>
    %115 = vector.shape_cast %112 : vector<20x4xf32> to vector<1x20x4xf32>
    tpu.vector_store %arg12[%c4, %c0_38, %c0_39], %115 {strides = array<i32>} : memref<12x20x4xf32, #tpu.memory_space<vmem>>, vector<1x20x4xf32>,
    %c5_i32 = arith.constant 5 : i32
    %116 = arith.addi %0, %c5_i32 : i32
    %117 = arith.index_cast %116 : i32 to index
    %118 = memref.load %arg4[%117] : memref<20xi32, #tpu.memory_space<smem>>
    %119 = arith.index_cast %116 : i32 to index
    %120 = memref.load %arg5[%119] : memref<20xi32, #tpu.memory_space<smem>>
    %121 = arith.index_cast %116 : i32 to index
    %122 = memref.load %arg6[%121] : memref<20xf32, #tpu.memory_space<smem>>
    %123 = arith.index_cast %116 : i32 to index
    %124 = memref.load %arg7[%123] : memref<20xf32, #tpu.memory_space<smem>>
    %c0_40 = arith.constant 0 : index
    %125 = arith.index_cast %118 : i32 to index
    %c0_41 = arith.constant 0 : index
    %c0_42 = arith.constant 0 : index
    %126 = vector.load %arg2[%c0_40, %125, %c0_41, %c0_42] : memref<1x8x20x4xf32, #tpu.memory_space<vmem>>, vector<1x1x20x4xf32>
    %127 = vector.shape_cast %126 : vector<1x1x20x4xf32> to vector<20x4xf32>
    %128 = vector.broadcast %122 : f32 to vector<20x4xf32>
    %129 = arith.mulf %127, %128 : vector<20x4xf32>
    %c0_43 = arith.constant 0 : index
    %130 = arith.index_cast %120 : i32 to index
    %c0_44 = arith.constant 0 : index
    %c0_45 = arith.constant 0 : index
    %131 = vector.load %arg2[%c0_43, %130, %c0_44, %c0_45] : memref<1x8x20x4xf32, #tpu.memory_space<vmem>>, vector<1x1x20x4xf32>
    %132 = vector.shape_cast %131 : vector<1x1x20x4xf32> to vector<20x4xf32>
    %133 = vector.broadcast %124 : f32 to vector<20x4xf32>
    %134 = arith.mulf %132, %133 : vector<20x4xf32>
    %135 = arith.addf %129, %134 : vector<20x4xf32>
    %c5 = arith.constant 5 : index
    %c0_46 = arith.constant 0 : index
    %c0_47 = arith.constant 0 : index
    %136 = vector.load %arg12[%c5, %c0_46, %c0_47] : memref<12x20x4xf32, #tpu.memory_space<vmem>>, vector<1x20x4xf32>
    %137 = vector.shape_cast %136 : vector<1x20x4xf32> to vector<20x4xf32>
    %138 = vector.shape_cast %135 : vector<20x4xf32> to vector<1x20x4xf32>
    tpu.vector_store %arg12[%c5, %c0_46, %c0_47], %138 {strides = array<i32>} : memref<12x20x4xf32, #tpu.memory_space<vmem>>, vector<1x20x4xf32>,
    %c6_i32 = arith.constant 6 : i32
    %139 = arith.addi %0, %c6_i32 : i32
    %140 = arith.index_cast %139 : i32 to index
    %141 = memref.load %arg4[%140] : memref<20xi32, #tpu.memory_space<smem>>
    %142 = arith.index_cast %139 : i32 to index
    %143 = memref.load %arg5[%142] : memref<20xi32, #tpu.memory_space<smem>>
    %144 = arith.index_cast %139 : i32 to index
    %145 = memref.load %arg6[%144] : memref<20xf32, #tpu.memory_space<smem>>
    %146 = arith.index_cast %139 : i32 to index
    %147 = memref.load %arg7[%146] : memref<20xf32, #tpu.memory_space<smem>>
    %c0_48 = arith.constant 0 : index
    %148 = arith.index_cast %141 : i32 to index
    %c0_49 = arith.constant 0 : index
    %c0_50 = arith.constant 0 : index
    %149 = vector.load %arg2[%c0_48, %148, %c0_49, %c0_50] : memref<1x8x20x4xf32, #tpu.memory_space<vmem>>, vector<1x1x20x4xf32>
    %150 = vector.shape_cast %149 : vector<1x1x20x4xf32> to vector<20x4xf32>
    %151 = vector.broadcast %145 : f32 to vector<20x4xf32>
    %152 = arith.mulf %150, %151 : vector<20x4xf32>
    %c0_51 = arith.constant 0 : index
    %153 = arith.index_cast %143 : i32 to index
    %c0_52 = arith.constant 0 : index
    %c0_53 = arith.constant 0 : index
    %154 = vector.load %arg2[%c0_51, %153, %c0_52, %c0_53] : memref<1x8x20x4xf32, #tpu.memory_space<vmem>>, vector<1x1x20x4xf32>
    %155 = vector.shape_cast %154 : vector<1x1x20x4xf32> to vector<20x4xf32>
    %156 = vector.broadcast %147 : f32 to vector<20x4xf32>
    %157 = arith.mulf %155, %156 : vector<20x4xf32>
    %158 = arith.addf %152, %157 : vector<20x4xf32>
    %c6 = arith.constant 6 : index
    %c0_54 = arith.constant 0 : index
    %c0_55 = arith.constant 0 : index
    %159 = vector.load %arg12[%c6, %c0_54, %c0_55] : memref<12x20x4xf32, #tpu.memory_space<vmem>>, vector<1x20x4xf32>
    %160 = vector.shape_cast %159 : vector<1x20x4xf32> to vector<20x4xf32>
    %161 = vector.shape_cast %158 : vector<20x4xf32> to vector<1x20x4xf32>
    tpu.vector_store %arg12[%c6, %c0_54, %c0_55], %161 {strides = array<i32>} : memref<12x20x4xf32, #tpu.memory_space<vmem>>, vector<1x20x4xf32>,
    %c7_i32 = arith.constant 7 : i32
    %162 = arith.addi %0, %c7_i32 : i32
    %163 = arith.index_cast %162 : i32 to index
    %164 = memref.load %arg4[%163] : memref<20xi32, #tpu.memory_space<smem>>
    %165 = arith.index_cast %162 : i32 to index
    %166 = memref.load %arg5[%165] : memref<20xi32, #tpu.memory_space<smem>>
    %167 = arith.index_cast %162 : i32 to index
    %168 = memref.load %arg6[%167] : memref<20xf32, #tpu.memory_space<smem>>
    %169 = arith.index_cast %162 : i32 to index
    %170 = memref.load %arg7[%169] : memref<20xf32, #tpu.memory_space<smem>>
    %c0_56 = arith.constant 0 : index
    %171 = arith.index_cast %164 : i32 to index
    %c0_57 = arith.constant 0 : index
    %c0_58 = arith.constant 0 : index
    %172 = vector.load %arg2[%c0_56, %171, %c0_57, %c0_58] : memref<1x8x20x4xf32, #tpu.memory_space<vmem>>, vector<1x1x20x4xf32>
    %173 = vector.shape_cast %172 : vector<1x1x20x4xf32> to vector<20x4xf32>
    %174 = vector.broadcast %168 : f32 to vector<20x4xf32>
    %175 = arith.mulf %173, %174 : vector<20x4xf32>
    %c0_59 = arith.constant 0 : index
    %176 = arith.index_cast %166 : i32 to index
    %c0_60 = arith.constant 0 : index
    %c0_61 = arith.constant 0 : index
    %177 = vector.load %arg2[%c0_59, %176, %c0_60, %c0_61] : memref<1x8x20x4xf32, #tpu.memory_space<vmem>>, vector<1x1x20x4xf32>
    %178 = vector.shape_cast %177 : vector<1x1x20x4xf32> to vector<20x4xf32>
    %179 = vector.broadcast %170 : f32 to vector<20x4xf32>
    %180 = arith.mulf %178, %179 : vector<20x4xf32>
    %181 = arith.addf %175, %180 : vector<20x4xf32>
    %c7 = arith.constant 7 : index
    %c0_62 = arith.constant 0 : index
    %c0_63 = arith.constant 0 : index
    %182 = vector.load %arg12[%c7, %c0_62, %c0_63] : memref<12x20x4xf32, #tpu.memory_space<vmem>>, vector<1x20x4xf32>
    %183 = vector.shape_cast %182 : vector<1x20x4xf32> to vector<20x4xf32>
    %184 = vector.shape_cast %181 : vector<20x4xf32> to vector<1x20x4xf32>
    tpu.vector_store %arg12[%c7, %c0_62, %c0_63], %184 {strides = array<i32>} : memref<12x20x4xf32, #tpu.memory_space<vmem>>, vector<1x20x4xf32>,
    %c8_i32_64 = arith.constant 8 : i32
    %185 = arith.addi %0, %c8_i32_64 : i32
    %186 = arith.index_cast %185 : i32 to index
    %187 = memref.load %arg4[%186] : memref<20xi32, #tpu.memory_space<smem>>
    %188 = arith.index_cast %185 : i32 to index
    %189 = memref.load %arg5[%188] : memref<20xi32, #tpu.memory_space<smem>>
    %190 = arith.index_cast %185 : i32 to index
    %191 = memref.load %arg6[%190] : memref<20xf32, #tpu.memory_space<smem>>
    %192 = arith.index_cast %185 : i32 to index
    %193 = memref.load %arg7[%192] : memref<20xf32, #tpu.memory_space<smem>>
    %c0_65 = arith.constant 0 : index
    %194 = arith.index_cast %187 : i32 to index
    %c0_66 = arith.constant 0 : index
    %c0_67 = arith.constant 0 : index
    %195 = vector.load %arg2[%c0_65, %194, %c0_66, %c0_67] : memref<1x8x20x4xf32, #tpu.memory_space<vmem>>, vector<1x1x20x4xf32>
    %196 = vector.shape_cast %195 : vector<1x1x20x4xf32> to vector<20x4xf32>
    %197 = vector.broadcast %191 : f32 to vector<20x4xf32>
    %198 = arith.mulf %196, %197 : vector<20x4xf32>
    %c0_68 = arith.constant 0 : index
    %199 = arith.index_cast %189 : i32 to index
    %c0_69 = arith.constant 0 : index
    %c0_70 = arith.constant 0 : index
    %200 = vector.load %arg2[%c0_68, %199, %c0_69, %c0_70] : memref<1x8x20x4xf32, #tpu.memory_space<vmem>>, vector<1x1x20x4xf32>
    %201 = vector.shape_cast %200 : vector<1x1x20x4xf32> to vector<20x4xf32>
    %202 = vector.broadcast %193 : f32 to vector<20x4xf32>
    %203 = arith.mulf %201, %202 : vector<20x4xf32>
    %204 = arith.addf %198, %203 : vector<20x4xf32>
    %c8 = arith.constant 8 : index
    %c0_71 = arith.constant 0 : index
    %c0_72 = arith.constant 0 : index
    %205 = vector.load %arg12[%c8, %c0_71, %c0_72] : memref<12x20x4xf32, #tpu.memory_space<vmem>>, vector<1x20x4xf32>
    %206 = vector.shape_cast %205 : vector<1x20x4xf32> to vector<20x4xf32>
    %207 = vector.shape_cast %204 : vector<20x4xf32> to vector<1x20x4xf32>
    tpu.vector_store %arg12[%c8, %c0_71, %c0_72], %207 {strides = array<i32>} : memref<12x20x4xf32, #tpu.memory_space<vmem>>, vector<1x20x4xf32>,
    %c9_i32 = arith.constant 9 : i32
    %208 = arith.addi %0, %c9_i32 : i32
    %209 = arith.index_cast %208 : i32 to index
    %210 = memref.load %arg4[%209] : memref<20xi32, #tpu.memory_space<smem>>
    %211 = arith.index_cast %208 : i32 to index
    %212 = memref.load %arg5[%211] : memref<20xi32, #tpu.memory_space<smem>>
    %213 = arith.index_cast %208 : i32 to index
    %214 = memref.load %arg6[%213] : memref<20xf32, #tpu.memory_space<smem>>
    %215 = arith.index_cast %208 : i32 to index
    %216 = memref.load %arg7[%215] : memref<20xf32, #tpu.memory_space<smem>>
    %c0_73 = arith.constant 0 : index
    %217 = arith.index_cast %210 : i32 to index
    %c0_74 = arith.constant 0 : index
    %c0_75 = arith.constant 0 : index
    %218 = vector.load %arg2[%c0_73, %217, %c0_74, %c0_75] : memref<1x8x20x4xf32, #tpu.memory_space<vmem>>, vector<1x1x20x4xf32>
    %219 = vector.shape_cast %218 : vector<1x1x20x4xf32> to vector<20x4xf32>
    %220 = vector.broadcast %214 : f32 to vector<20x4xf32>
    %221 = arith.mulf %219, %220 : vector<20x4xf32>
    %c0_76 = arith.constant 0 : index
    %222 = arith.index_cast %212 : i32 to index
    %c0_77 = arith.constant 0 : index
    %c0_78 = arith.constant 0 : index
    %223 = vector.load %arg2[%c0_76, %222, %c0_77, %c0_78] : memref<1x8x20x4xf32, #tpu.memory_space<vmem>>, vector<1x1x20x4xf32>
    %224 = vector.shape_cast %223 : vector<1x1x20x4xf32> to vector<20x4xf32>
    %225 = vector.broadcast %216 : f32 to vector<20x4xf32>
    %226 = arith.mulf %224, %225 : vector<20x4xf32>
    %227 = arith.addf %221, %226 : vector<20x4xf32>
    %c9 = arith.constant 9 : index
    %c0_79 = arith.constant 0 : index
    %c0_80 = arith.constant 0 : index
    %228 = vector.load %arg12[%c9, %c0_79, %c0_80] : memref<12x20x4xf32, #tpu.memory_space<vmem>>, vector<1x20x4xf32>
    %229 = vector.shape_cast %228 : vector<1x20x4xf32> to vector<20x4xf32>
    %230 = vector.shape_cast %227 : vector<20x4xf32> to vector<1x20x4xf32>
    tpu.vector_store %arg12[%c9, %c0_79, %c0_80], %230 {strides = array<i32>} : memref<12x20x4xf32, #tpu.memory_space<vmem>>, vector<1x20x4xf32>,
    %c10_i32 = arith.constant 10 : i32
    %231 = arith.addi %0, %c10_i32 : i32
    %232 = arith.index_cast %231 : i32 to index
    %233 = memref.load %arg4[%232] : memref<20xi32, #tpu.memory_space<smem>>
    %234 = arith.index_cast %231 : i32 to index
    %235 = memref.load %arg5[%234] : memref<20xi32, #tpu.memory_space<smem>>
    %236 = arith.index_cast %231 : i32 to index
    %237 = memref.load %arg6[%236] : memref<20xf32, #tpu.memory_space<smem>>
    %238 = arith.index_cast %231 : i32 to index
    %239 = memref.load %arg7[%238] : memref<20xf32, #tpu.memory_space<smem>>
    %c0_81 = arith.constant 0 : index
    %240 = arith.index_cast %233 : i32 to index
    %c0_82 = arith.constant 0 : index
    %c0_83 = arith.constant 0 : index
    %241 = vector.load %arg2[%c0_81, %240, %c0_82, %c0_83] : memref<1x8x20x4xf32, #tpu.memory_space<vmem>>, vector<1x1x20x4xf32>
    %242 = vector.shape_cast %241 : vector<1x1x20x4xf32> to vector<20x4xf32>
    %243 = vector.broadcast %237 : f32 to vector<20x4xf32>
    %244 = arith.mulf %242, %243 : vector<20x4xf32>
    %c0_84 = arith.constant 0 : index
    %245 = arith.index_cast %235 : i32 to index
    %c0_85 = arith.constant 0 : index
    %c0_86 = arith.constant 0 : index
    %246 = vector.load %arg2[%c0_84, %245, %c0_85, %c0_86] : memref<1x8x20x4xf32, #tpu.memory_space<vmem>>, vector<1x1x20x4xf32>
    %247 = vector.shape_cast %246 : vector<1x1x20x4xf32> to vector<20x4xf32>
    %248 = vector.broadcast %239 : f32 to vector<20x4xf32>
    %249 = arith.mulf %247, %248 : vector<20x4xf32>
    %250 = arith.addf %244, %249 : vector<20x4xf32>
    %c10 = arith.constant 10 : index
    %c0_87 = arith.constant 0 : index
    %c0_88 = arith.constant 0 : index
    %251 = vector.load %arg12[%c10, %c0_87, %c0_88] : memref<12x20x4xf32, #tpu.memory_space<vmem>>, vector<1x20x4xf32>
    %252 = vector.shape_cast %251 : vector<1x20x4xf32> to vector<20x4xf32>
    %253 = vector.shape_cast %250 : vector<20x4xf32> to vector<1x20x4xf32>
    tpu.vector_store %arg12[%c10, %c0_87, %c0_88], %253 {strides = array<i32>} : memref<12x20x4xf32, #tpu.memory_space<vmem>>, vector<1x20x4xf32>,
    %c11_i32 = arith.constant 11 : i32
    %254 = arith.addi %0, %c11_i32 : i32
    %255 = arith.index_cast %254 : i32 to index
    %256 = memref.load %arg4[%255] : memref<20xi32, #tpu.memory_space<smem>>
    %257 = arith.index_cast %254 : i32 to index
    %258 = memref.load %arg5[%257] : memref<20xi32, #tpu.memory_space<smem>>
    %259 = arith.index_cast %254 : i32 to index
    %260 = memref.load %arg6[%259] : memref<20xf32, #tpu.memory_space<smem>>
    %261 = arith.index_cast %254 : i32 to index
    %262 = memref.load %arg7[%261] : memref<20xf32, #tpu.memory_space<smem>>
    %c0_89 = arith.constant 0 : index
    %263 = arith.index_cast %256 : i32 to index
    %c0_90 = arith.constant 0 : index
    %c0_91 = arith.constant 0 : index
    %264 = vector.load %arg2[%c0_89, %263, %c0_90, %c0_91] : memref<1x8x20x4xf32, #tpu.memory_space<vmem>>, vector<1x1x20x4xf32>
    %265 = vector.shape_cast %264 : vector<1x1x20x4xf32> to vector<20x4xf32>
    %266 = vector.broadcast %260 : f32 to vector<20x4xf32>
    %267 = arith.mulf %265, %266 : vector<20x4xf32>
    %c0_92 = arith.constant 0 : index
    %268 = arith.index_cast %258 : i32 to index
    %c0_93 = arith.constant 0 : index
    %c0_94 = arith.constant 0 : index
    %269 = vector.load %arg2[%c0_92, %268, %c0_93, %c0_94] : memref<1x8x20x4xf32, #tpu.memory_space<vmem>>, vector<1x1x20x4xf32>
    %270 = vector.shape_cast %269 : vector<1x1x20x4xf32> to vector<20x4xf32>
    %271 = vector.broadcast %262 : f32 to vector<20x4xf32>
    %272 = arith.mulf %270, %271 : vector<20x4xf32>
    %273 = arith.addf %267, %272 : vector<20x4xf32>
    %c11 = arith.constant 11 : index
    %c0_95 = arith.constant 0 : index
    %c0_96 = arith.constant 0 : index
    %274 = vector.load %arg12[%c11, %c0_95, %c0_96] : memref<12x20x4xf32, #tpu.memory_space<vmem>>, vector<1x20x4xf32>
    %275 = vector.shape_cast %274 : vector<1x20x4xf32> to vector<20x4xf32>
    %276 = vector.shape_cast %273 : vector<20x4xf32> to vector<1x20x4xf32>
    tpu.vector_store %arg12[%c11, %c0_95, %c0_96], %276 {strides = array<i32>} : memref<12x20x4xf32, #tpu.memory_space<vmem>>, vector<1x20x4xf32>,
    %c0_97 = arith.constant 0 : index
    %c0_98 = arith.constant 0 : index
    %c0_99 = arith.constant 0 : index
    %277 = vector.load %arg12[%c0_97, %c0_98, %c0_99] : memref<12x20x4xf32, #tpu.memory_space<vmem>>, vector<12x20x4xf32>
    %278 = vector.extract_strided_slice %277 {offsets = [0, 0, 0], sizes = [8, 20, 4], strides = [1, 1, 1]} : vector<12x20x4xf32> to vector<8x20x4xf32>
    %279 = vector.extract_strided_slice %278 {offsets = [0, 0, 0], sizes = [8, 16, 4], strides = [1, 1, 1]} : vector<8x20x4xf32> to vector<8x16x4xf32>
    %c0_100 = arith.constant 0 : index
    %c0_101 = arith.constant 0 : index
    %c0_102 = arith.constant 0 : index
    %280 = vector.load %arg8[%c0_100, %c0_101, %c0_102] : memref<9x4x8xf32, #tpu.memory_space<vmem>>, vector<1x4x8xf32>
    %281 = vector.shape_cast %280 : vector<1x4x8xf32> to vector<4x8xf32>
    "tpu.trace_start"() <{level = 10 : i32, message = "hwc,co->hwo"}> : () -> ()
    %cst = arith.constant dense<0.000000e+00> : vector<8x16x8xf32>
    %282 = tpu.matmul %279, %281, %cst {dimension_numbers = #tpu.dot_dimension_numbers<[2], [0], [0, 1], [1], [0, 0, 0, 1, 1, 1], [], []>} : vector<8x16x4xf32>, vector<4x8xf32>, vector<8x16x8xf32> -> vector<8x16x8xf32>
    "tpu.trace_stop"() : () -> ()
    %283 = vector.extract_strided_slice %278 {offsets = [0, 2, 0], sizes = [8, 16, 4], strides = [1, 1, 1]} : vector<8x20x4xf32> to vector<8x16x4xf32>
    %c1_103 = arith.constant 1 : index
    %c0_104 = arith.constant 0 : index
    %c0_105 = arith.constant 0 : index
    %284 = vector.load %arg8[%c1_103, %c0_104, %c0_105] : memref<9x4x8xf32, #tpu.memory_space<vmem>>, vector<1x4x8xf32>
    %285 = vector.shape_cast %284 : vector<1x4x8xf32> to vector<4x8xf32>
    "tpu.trace_start"() <{level = 10 : i32, message = "hwc,co->hwo"}> : () -> ()
    %cst_106 = arith.constant dense<0.000000e+00> : vector<8x16x8xf32>
    %286 = tpu.matmul %283, %285, %cst_106 {dimension_numbers = #tpu.dot_dimension_numbers<[2], [0], [0, 1], [1], [0, 0, 0, 1, 1, 1], [], []>} : vector<8x16x4xf32>, vector<4x8xf32>, vector<8x16x8xf32> -> vector<8x16x8xf32>
    "tpu.trace_stop"() : () -> ()
    %287 = arith.addf %282, %286 : vector<8x16x8xf32>
    %288 = vector.extract_strided_slice %278 {offsets = [0, 4, 0], sizes = [8, 16, 4], strides = [1, 1, 1]} : vector<8x20x4xf32> to vector<8x16x4xf32>
    %c2_107 = arith.constant 2 : index
    %c0_108 = arith.constant 0 : index
    %c0_109 = arith.constant 0 : index
    %289 = vector.load %arg8[%c2_107, %c0_108, %c0_109] : memref<9x4x8xf32, #tpu.memory_space<vmem>>, vector<1x4x8xf32>
    %290 = vector.shape_cast %289 : vector<1x4x8xf32> to vector<4x8xf32>
    "tpu.trace_start"() <{level = 10 : i32, message = "hwc,co->hwo"}> : () -> ()
    %cst_110 = arith.constant dense<0.000000e+00> : vector<8x16x8xf32>
    %291 = tpu.matmul %288, %290, %cst_110 {dimension_numbers = #tpu.dot_dimension_numbers<[2], [0], [0, 1], [1], [0, 0, 0, 1, 1, 1], [], []>} : vector<8x16x4xf32>, vector<4x8xf32>, vector<8x16x8xf32> -> vector<8x16x8xf32>
    "tpu.trace_stop"() : () -> ()
    %292 = arith.addf %287, %291 : vector<8x16x8xf32>
    %293 = vector.extract_strided_slice %277 {offsets = [2, 0, 0], sizes = [8, 20, 4], strides = [1, 1, 1]} : vector<12x20x4xf32> to vector<8x20x4xf32>
    %294 = vector.extract_strided_slice %293 {offsets = [0, 0, 0], sizes = [8, 16, 4], strides = [1, 1, 1]} : vector<8x20x4xf32> to vector<8x16x4xf32>
    %c3_111 = arith.constant 3 : index
    %c0_112 = arith.constant 0 : index
    %c0_113 = arith.constant 0 : index
    %295 = vector.load %arg8[%c3_111, %c0_112, %c0_113] : memref<9x4x8xf32, #tpu.memory_space<vmem>>, vector<1x4x8xf32>
    %296 = vector.shape_cast %295 : vector<1x4x8xf32> to vector<4x8xf32>
    "tpu.trace_start"() <{level = 10 : i32, message = "hwc,co->hwo"}> : () -> ()
    %cst_114 = arith.constant dense<0.000000e+00> : vector<8x16x8xf32>
    %297 = tpu.matmul %294, %296, %cst_114 {dimension_numbers = #tpu.dot_dimension_numbers<[2], [0], [0, 1], [1], [0, 0, 0, 1, 1, 1], [], []>} : vector<8x16x4xf32>, vector<4x8xf32>, vector<8x16x8xf32> -> vector<8x16x8xf32>
    "tpu.trace_stop"() : () -> ()
    %298 = arith.addf %292, %297 : vector<8x16x8xf32>
    %299 = vector.extract_strided_slice %293 {offsets = [0, 2, 0], sizes = [8, 16, 4], strides = [1, 1, 1]} : vector<8x20x4xf32> to vector<8x16x4xf32>
    %c4_115 = arith.constant 4 : index
    %c0_116 = arith.constant 0 : index
    %c0_117 = arith.constant 0 : index
    %300 = vector.load %arg8[%c4_115, %c0_116, %c0_117] : memref<9x4x8xf32, #tpu.memory_space<vmem>>, vector<1x4x8xf32>
    %301 = vector.shape_cast %300 : vector<1x4x8xf32> to vector<4x8xf32>
    "tpu.trace_start"() <{level = 10 : i32, message = "hwc,co->hwo"}> : () -> ()
    %cst_118 = arith.constant dense<0.000000e+00> : vector<8x16x8xf32>
    %302 = tpu.matmul %299, %301, %cst_118 {dimension_numbers = #tpu.dot_dimension_numbers<[2], [0], [0, 1], [1], [0, 0, 0, 1, 1, 1], [], []>} : vector<8x16x4xf32>, vector<4x8xf32>, vector<8x16x8xf32> -> vector<8x16x8xf32>
    "tpu.trace_stop"() : () -> ()
    %303 = arith.addf %298, %302 : vector<8x16x8xf32>
    %304 = vector.extract_strided_slice %293 {offsets = [0, 4, 0], sizes = [8, 16, 4], strides = [1, 1, 1]} : vector<8x20x4xf32> to vector<8x16x4xf32>
    %c5_119 = arith.constant 5 : index
    %c0_120 = arith.constant 0 : index
    %c0_121 = arith.constant 0 : index
    %305 = vector.load %arg8[%c5_119, %c0_120, %c0_121] : memref<9x4x8xf32, #tpu.memory_space<vmem>>, vector<1x4x8xf32>
    %306 = vector.shape_cast %305 : vector<1x4x8xf32> to vector<4x8xf32>
    "tpu.trace_start"() <{level = 10 : i32, message = "hwc,co->hwo"}> : () -> ()
    %cst_122 = arith.constant dense<0.000000e+00> : vector<8x16x8xf32>
    %307 = tpu.matmul %304, %306, %cst_122 {dimension_numbers = #tpu.dot_dimension_numbers<[2], [0], [0, 1], [1], [0, 0, 0, 1, 1, 1], [], []>} : vector<8x16x4xf32>, vector<4x8xf32>, vector<8x16x8xf32> -> vector<8x16x8xf32>
    "tpu.trace_stop"() : () -> ()
    %308 = arith.addf %303, %307 : vector<8x16x8xf32>
    %309 = vector.extract_strided_slice %277 {offsets = [4, 0, 0], sizes = [8, 20, 4], strides = [1, 1, 1]} : vector<12x20x4xf32> to vector<8x20x4xf32>
    %310 = vector.extract_strided_slice %309 {offsets = [0, 0, 0], sizes = [8, 16, 4], strides = [1, 1, 1]} : vector<8x20x4xf32> to vector<8x16x4xf32>
    %c6_123 = arith.constant 6 : index
    %c0_124 = arith.constant 0 : index
    %c0_125 = arith.constant 0 : index
    %311 = vector.load %arg8[%c6_123, %c0_124, %c0_125] : memref<9x4x8xf32, #tpu.memory_space<vmem>>, vector<1x4x8xf32>
    %312 = vector.shape_cast %311 : vector<1x4x8xf32> to vector<4x8xf32>
    "tpu.trace_start"() <{level = 10 : i32, message = "hwc,co->hwo"}> : () -> ()
    %cst_126 = arith.constant dense<0.000000e+00> : vector<8x16x8xf32>
    %313 = tpu.matmul %310, %312, %cst_126 {dimension_numbers = #tpu.dot_dimension_numbers<[2], [0], [0, 1], [1], [0, 0, 0, 1, 1, 1], [], []>} : vector<8x16x4xf32>, vector<4x8xf32>, vector<8x16x8xf32> -> vector<8x16x8xf32>
    "tpu.trace_stop"() : () -> ()
    %314 = arith.addf %308, %313 : vector<8x16x8xf32>
    %315 = vector.extract_strided_slice %309 {offsets = [0, 2, 0], sizes = [8, 16, 4], strides = [1, 1, 1]} : vector<8x20x4xf32> to vector<8x16x4xf32>
    %c7_127 = arith.constant 7 : index
    %c0_128 = arith.constant 0 : index
    %c0_129 = arith.constant 0 : index
    %316 = vector.load %arg8[%c7_127, %c0_128, %c0_129] : memref<9x4x8xf32, #tpu.memory_space<vmem>>, vector<1x4x8xf32>
    %317 = vector.shape_cast %316 : vector<1x4x8xf32> to vector<4x8xf32>
    "tpu.trace_start"() <{level = 10 : i32, message = "hwc,co->hwo"}> : () -> ()
    %cst_130 = arith.constant dense<0.000000e+00> : vector<8x16x8xf32>
    %318 = tpu.matmul %315, %317, %cst_130 {dimension_numbers = #tpu.dot_dimension_numbers<[2], [0], [0, 1], [1], [0, 0, 0, 1, 1, 1], [], []>} : vector<8x16x4xf32>, vector<4x8xf32>, vector<8x16x8xf32> -> vector<8x16x8xf32>
    "tpu.trace_stop"() : () -> ()
    %319 = arith.addf %314, %318 : vector<8x16x8xf32>
    %320 = vector.extract_strided_slice %309 {offsets = [0, 4, 0], sizes = [8, 16, 4], strides = [1, 1, 1]} : vector<8x20x4xf32> to vector<8x16x4xf32>
    %c8_131 = arith.constant 8 : index
    %c0_132 = arith.constant 0 : index
    %c0_133 = arith.constant 0 : index
    %321 = vector.load %arg8[%c8_131, %c0_132, %c0_133] : memref<9x4x8xf32, #tpu.memory_space<vmem>>, vector<1x4x8xf32>
    %322 = vector.shape_cast %321 : vector<1x4x8xf32> to vector<4x8xf32>
    "tpu.trace_start"() <{level = 10 : i32, message = "hwc,co->hwo"}> : () -> ()
    %cst_134 = arith.constant dense<0.000000e+00> : vector<8x16x8xf32>
    %323 = tpu.matmul %320, %322, %cst_134 {dimension_numbers = #tpu.dot_dimension_numbers<[2], [0], [0, 1], [1], [0, 0, 0, 1, 1, 1], [], []>} : vector<8x16x4xf32>, vector<4x8xf32>, vector<8x16x8xf32> -> vector<8x16x8xf32>
    "tpu.trace_stop"() : () -> ()
    %324 = arith.addf %319, %323 : vector<8x16x8xf32>
    %c0_135 = arith.constant 0 : index
    %c0_136 = arith.constant 0 : index
    %c0_137 = arith.constant 0 : index
    %c0_138 = arith.constant 0 : index
    %325 = vector.load %arg3[%c0_135, %c0_136, %c0_137, %c0_138] : memref<1x8x16x6xf32, #tpu.memory_space<vmem>>, vector<1x8x16x6xf32>
    %326 = vector.shape_cast %325 : vector<1x8x16x6xf32> to vector<8x16x6xf32>
    %c0_139 = arith.constant 0 : index
    %c0_140 = arith.constant 0 : index
    %327 = vector.load %arg9[%c0_139, %c0_140] : memref<6x8xf32, #tpu.memory_space<vmem>>, vector<6x8xf32>
    "tpu.trace_start"() <{level = 10 : i32, message = "hwc,co->hwo"}> : () -> ()
    %cst_141 = arith.constant dense<0.000000e+00> : vector<8x16x8xf32>
    %328 = tpu.matmul %326, %327, %cst_141 {dimension_numbers = #tpu.dot_dimension_numbers<[2], [0], [0, 1], [1], [0, 0, 0, 1, 1, 1], [], []>} : vector<8x16x6xf32>, vector<6x8xf32>, vector<8x16x8xf32> -> vector<8x16x8xf32>
    "tpu.trace_stop"() : () -> ()
    %329 = arith.addf %324, %328 : vector<8x16x8xf32>
    %c0_142 = arith.constant 0 : index
    %c0_143 = arith.constant 0 : index
    %330 = vector.load %arg10[%c0_142, %c0_143] : memref<1x8xf32, #tpu.memory_space<vmem>>, vector<1x8xf32>
    %331 = vector.shape_cast %330 : vector<1x8xf32> to vector<1x1x8xf32>
    %332 = vector.broadcast %331 : vector<1x1x8xf32> to vector<8x16x8xf32>
    %333 = arith.addf %329, %332 : vector<8x16x8xf32>
    %cst_144 = arith.constant 0.000000e+00 : f32
    %334 = vector.broadcast %cst_144 : f32 to vector<8x16x8xf32>
    %335 = arith.maximumf %333, %334 : vector<8x16x8xf32>
    %c0_145 = arith.constant 0 : index
    %c0_146 = arith.constant 0 : index
    %c0_147 = arith.constant 0 : index
    %c0_148 = arith.constant 0 : index
    %336 = vector.load %arg11[%c0_145, %c0_146, %c0_147, %c0_148] : memref<1x8x16x8xf32, #tpu.memory_space<vmem>>, vector<1x8x16x8xf32>
    %337 = vector.shape_cast %336 : vector<1x8x16x8xf32> to vector<8x16x8xf32>
    %338 = vector.shape_cast %335 : vector<8x16x8xf32> to vector<1x8x16x8xf32>
    tpu.vector_store %arg11[%c0_145, %c0_146, %c0_147, %c0_148], %338 {strides = array<i32>} : memref<1x8x16x8xf32, #tpu.memory_space<vmem>>, vector<1x8x16x8xf32>,
    return
  }
  func.func @transform_0(%arg0: i32, %arg1: i32) -> (i32, i32, i32, i32) {
    %c0_i32 = arith.constant 0 : i32
    %c0_i32_0 = arith.constant 0 : i32
    %c0_i32_1 = arith.constant 0 : i32
    %c0_i32_2 = arith.constant 0 : i32
    return %arg0, %c0_i32, %c0_i32_0, %c0_i32_1 : i32, i32, i32, i32
  }
  func.func @transform_1(%arg0: i32, %arg1: i32) -> (i32, i32, i32, i32) {
    %c0_i32 = arith.constant 0 : i32
    %c0_i32_0 = arith.constant 0 : i32
    %c0_i32_1 = arith.constant 0 : i32
    return %arg0, %arg1, %c0_i32, %c0_i32_0 : i32, i32, i32, i32
  }
  func.func @transform_2(%arg0: i32, %arg1: i32) -> i32 {
    %c0_i32 = arith.constant 0 : i32
    %c0_i32_0 = arith.constant 0 : i32
    return %c0_i32 : i32
  }
  func.func @transform_3(%arg0: i32, %arg1: i32) -> i32 {
    %c0_i32 = arith.constant 0 : i32
    %c0_i32_0 = arith.constant 0 : i32
    return %c0_i32 : i32
  }
  func.func @transform_4(%arg0: i32, %arg1: i32) -> i32 {
    %c0_i32 = arith.constant 0 : i32
    %c0_i32_0 = arith.constant 0 : i32
    return %c0_i32 : i32
  }
  func.func @transform_5(%arg0: i32, %arg1: i32) -> i32 {
    %c0_i32 = arith.constant 0 : i32
    %c0_i32_0 = arith.constant 0 : i32
    return %c0_i32 : i32
  }
  func.func @transform_6(%arg0: i32, %arg1: i32) -> (i32, i32, i32) {
    %c0_i32 = arith.constant 0 : i32
    %c0_i32_0 = arith.constant 0 : i32
    %c0_i32_1 = arith.constant 0 : i32
    %c0_i32_2 = arith.constant 0 : i32
    return %c0_i32, %c0_i32_0, %c0_i32_1 : i32, i32, i32
  }
  func.func @transform_7(%arg0: i32, %arg1: i32) -> (i32, i32) {
    %c0_i32 = arith.constant 0 : i32
    %c0_i32_0 = arith.constant 0 : i32
    %c0_i32_1 = arith.constant 0 : i32
    return %c0_i32, %c0_i32_0 : i32, i32
  }
  func.func @transform_8(%arg0: i32, %arg1: i32) -> (i32, i32) {
    %c0_i32 = arith.constant 0 : i32
    %c0_i32_0 = arith.constant 0 : i32
    %c0_i32_1 = arith.constant 0 : i32
    return %c0_i32, %c0_i32_0 : i32, i32
  }
  func.func @transform_9(%arg0: i32, %arg1: i32) -> (i32, i32, i32, i32) {
    %c0_i32 = arith.constant 0 : i32
    %c0_i32_0 = arith.constant 0 : i32
    %c0_i32_1 = arith.constant 0 : i32
    return %arg0, %arg1, %c0_i32, %c0_i32_0 : i32, i32, i32, i32
  }
}

</mosaic_0001>

<bundles_post_ra>
// kernel: tpu_custom_call.1
= control target key start
LH: loop header
LB: loop body
LE: loop exit
PB: predicated region body
PF: predicated region fallthrough
CT: control target
= control target key end

     0   :  { %s5271_s0 = inlined_call_operand.vmem [shape: f32[2,8,20,4], index: 0, kind: input, shape index: {}]   ;;  %s5272_s1 = inlined_call_operand.vmem [shape: f32[2,16,16,6], index: 1, kind: input, shape index: {}]   ;;  %s5273_s2 = inlined_call_operand.vmem [shape: s32[20], index: 2, kind: input, shape index: {}]   ;;  %s5274_s3 = inlined_call_operand.vmem [shape: s32[20], index: 3, kind: input, shape index: {}]   ;;  %s5275_s4 = inlined_call_operand.vmem [shape: f32[20], index: 4, kind: input, shape index: {}]   ;;  %s5276_s5 = inlined_call_operand.vmem [shape: f32[20], index: 5, kind: input, shape index: {}]   ;;  %s5277_s6 = inlined_call_operand.vmem [shape: f32[9,4,8], index: 6, kind: input, shape index: {}]   ;;  %s5278_s7 = inlined_call_operand.vmem [shape: f32[6,8], index: 7, kind: input, shape index: {}]   ;;  %s5279_s8 = inlined_call_operand.vmem [shape: f32[1,8], index: 8, kind: input, shape index: {}]   ;;  %s5280_s9 = inlined_call_operand.vmem [shape: f32[2,16,16,8], index: 9, kind: output, shape index: {}]  }
   0x1   :  { %5284 = sst [smem:[#allocation34_spill]] %s5271_s0 }
   0x2   :  { %5285 = sst [smem:[#allocation35_spill]] %s5273_s2 }
   0x3   :  { %5286 = sst [smem:[#allocation36_spill]] %s5274_s3 }
   0x4   :  { %5287 = sst [smem:[#allocation37_spill]] %s5275_s4 }
   0x5   :  { %5288 = sst [smem:[#allocation38_spill]] %s5276_s5 }
   0x6   :  { %14 = vsyncpa [#allocation4], 0 }
   0x7   :  { %15 = vsyncpa [#allocation6], 0 }
   0x8   :  { %16 = vsyncpa [#allocation9], 0  ;;  %s3977_s30 = smov 0   ;;  %s3979_s10 = smov 0  }
   0x9   :  { %s3981_s11 = smov 0   ;;  %s3983_s12 = smov 0  }
   0xa   :  { %s3985_s13 = smov 0  }
   0xb LB: > { %s5289_s3 = sld [smem:[#allocation36_spill]]  ;;  %s3095_s17 = sadd.s32 4294967295, %s3921_s13   ;;  %s3921_s13 = sphi %s3985_s13, %s22_s13   ;;  %s3917_s12 = sphi %s3983_s12, %s5345_s12   ;;  %s3913_s11 = sphi %s3981_s11, %s5344_s11   ;;  %s3909_s10 = sphi %s3979_s10, %s5343_s10   ;;  %s3905_s30 = sphi %s3977_s30, %s5342_s30  }
   0xc   : > { %p3097_p0 = scmp.ge.s32.totalorder %s3921_s13, 1  ;;  %p268_p1 = scmp.lt.s32.totalorder %s3921_s13, 5 }
   0xd   : > { %p4008_p2 = scmp.eq.s32.totalorder %s3095_s17, 0  ;;  %s31_s21 = sadd.s32 1, %s3913_s11 }
   0xe   : > { %p4012_p3 = pnand %p3097_p0, %p268_p1  ;;  %p4025_p6 = scmp.ge.s32.totalorder %s31_s21, 2 }
   0xf   : > { %s5290_s18 = scalar_select %p4008_p2, 1, 0 }
  0x10   : > { %s5291_s19 = scalar_select %p4012_p3, 1, 0 }
  0x11   : > { %s292_s16 = sshll.u32 %s5289_s3, 4  ;;  %p3746_p4 = pneg %p4012_p3  ;;  %s293_s16 = int_to_ptr.vmem [resolvable:$true] %s292_s16 }
  0x12   : > { %s3811_s23 = scalar_lea.vmem %s293_s16, 16  ;;  %p3819_p11 = scmp.lt.s32.totalorder %s293_s16, %s293_s16 }
  0x13   : > { %p4020_p5 = pnand %p4008_p2, %p3746_p4  ;;  %p3812_p7 = scmp.ne.s32.totalorder %s293_s16, %s3811_s23 }
  0x14   : > { %p3820_p12 = scmp.lt.s32.totalorder %s3811_s23, %s3811_s23 }
  0x15   : > { %p3813_p8 = pneg %p4020_p5 }
  0x16   : > { %p3821_p13 = por %p3820_p12, %p3819_p11 }
  0x17   : > { %p3814_p9 = pnand %p3813_p8, %p3812_p7 }
  0x19   : > { %p3815_p10 = pneg %p3814_p9 }
  0x1b   : > { %p3822_p0 = pnand %p3821_p13, %p3815_p10 }
  0x1d   : > { %3825 = shalt.err (!%p3822_p0)
}
  0x1e   : > { %s3923_s24 = smov [#allocation5]   ;;  %s5347_s21 = smov (%p4025_p6, %s31_s21), 0 }
  0x1f   : > { %3752 = dma.vmem_to_smem (!%p4020_p5), %s293_s16, 16, %s3923_s24, [#allocation6]  }
  0x20   : > { %s34_s25 = sadd.s32 1, %s3917_s12  ;;  %s5294_s2 = sld [smem:[#allocation35_spill]] }
  0x21   : > { %s5349_s25 = smov (!%p4025_p6, %s34_s25), %s3917_s12  ;;  %s5295_s4 = sld [smem:[#allocation37_spill]] }
  0x22   : > { %p36_p1 = scmp.ge.s32.totalorder %s5349_s25, 2 }
  0x26   : > { %s281_s28 = sshll.u32 %s5294_s2, 4  ;;  %s282_s28 = int_to_ptr.vmem [resolvable:$true] %s281_s28 }
  0x27   : > { %s303_s15 = sshll.u32 %s5295_s4, 4  ;;  %s3826_s17 = scalar_lea.vmem %s282_s28, 16  ;;  %s304_s15 = int_to_ptr.vmem [resolvable:$true] %s303_s15 }
  0x28   : > { %p3827_p4 = scmp.ne.s32.totalorder %s282_s28, %s3826_s17  ;;  %p3834_p10 = scmp.lt.s32.totalorder %s282_s28, %s282_s28 }
  0x29   : > { %p3835_p11 = scmp.lt.s32.totalorder %s3826_s17, %s3826_s17 }
  0x2a   : > { %p3829_p7 = pnand %p3827_p4, %p3813_p8 }
  0x2b   : > { %p3836_p12 = por %p3835_p11, %p3834_p10 }
  0x2c   : > { %p3830_p9 = pneg %p3829_p7 }
  0x2e   : > { %p3837_p13 = pnand %p3836_p12, %p3830_p9 }
  0x30   : > { %3840 = shalt.err (!%p3837_p13)
}
  0x31   : > { %s3924_s16 = smov [#allocation3]   ;;  %s5351_s25 = smov (%p36_p1, %s5349_s25), 0 }
  0x32   : > { %3749 = dma.vmem_to_smem (!%p4020_p5), %s282_s28, 16, %s3924_s16, [#allocation4]  }
  0x33   : > { %s3841_s22 = scalar_lea.vmem %s304_s15, 16  ;;  %p3849_p7 = scmp.lt.s32.totalorder %s304_s15, %s304_s15 }
  0x34   : > { %p3842_p6 = scmp.ne.s32.totalorder %s304_s15, %s3841_s22  ;;  %p3850_p2 = scmp.lt.s32.totalorder %s3841_s22, %s3841_s22 }
  0x36   : > { %p3844_p0 = pnand %p3842_p6, %p3813_p8  ;;  %p3851_p3 = por %p3850_p2, %p3849_p7 }
  0x38   : > { %p3845_p4 = pneg %p3844_p0 }
  0x3a   : > { %p3852_p10 = pnand %p3851_p3, %p3845_p4 }
  0x3c   : > { %3855 = shalt.err (!%p3852_p10)
}
  0x3d   : > { %s3925_s23 = smov [#allocation7]   ;;  %s5296_s5 = sld [smem:[#allocation38_spill]] }
  0x3e   : > { %3755 = dma.vmem_to_smem (!%p4020_p5), %s304_s15, 16, %s3925_s23, [#allocation6]  }
  0x43   : > { %s314_s27 = sshll.u32 %s5296_s5, 4  ;;  %s315_s27 = int_to_ptr.vmem [resolvable:$true] %s314_s27 }
  0x44   : > { %s3856_s28 = scalar_lea.vmem %s315_s27, 16  ;;  %p3864_p12 = scmp.lt.s32.totalorder %s315_s27, %s315_s27 }
  0x45   : > { %p3857_p1 = scmp.ne.s32.totalorder %s315_s27, %s3856_s28  ;;  %p3865_p2 = scmp.lt.s32.totalorder %s3856_s28, %s3856_s28 }
  0x47   : > { %p3859_p9 = pnand %p3857_p1, %p3813_p8  ;;  %p3866_p3 = por %p3865_p2, %p3864_p12 }
  0x49   : > { %p3860_p11 = pneg %p3859_p9 }
  0x4b   : > { %p3867_p13 = pnand %p3866_p3, %p3860_p11 }
  0x4d   : > { %3870 = shalt.err (!%p3867_p13)
}
  0x4e   : > { %s3926_s29 = smov [#allocation8]   ;;  %p5297_p6 = scmp.ne.s32.totalorder %s5291_s19, 0 }
  0x4f   : > { %3758 = dma.vmem_to_smem (!%p4020_p5), %s315_s27, 16, %s3926_s29, [#allocation9]  }
  0x50   : > { %358 = sbr.rel (%p5297_p6) target bundleno = 490 (0x1ea), region = 56 }
  0x55   : > { %p5298_p0 = scmp.ne.s32.totalorder %s5290_s18, 0 }
  0x57   : > { %3892 = dma.done.wait (%p5298_p0), [#allocation4], 16  }
  0x58   : > { %3894 = vsyncadd (%p5298_p0), [#allocation4], 4294967280 }
  0x59   : > { %3896 = dma.done.wait (%p5298_p0), [#allocation6], 32  }
  0x5a   : > { %3898 = vsyncadd (%p5298_p0), [#allocation6], 4294967264 }
  0x5b   : > { %3900 = dma.done.wait (%p5298_p0), [#allocation9], 16  }
  0x5c   : > { %3902 = vsyncadd (%p5298_p0), [#allocation9], 4294967280 }
  0x5d   : > { %376 = sfence }
  0x5e   : > { %v3118_v0 = vld [vmem:[%s5277_s6 + $0x4] sm:$0xf]  ;;  %vm946_vm0 = vcmask 1043456   ;;  %v846_v1 = vld [vmem:[%s5277_s6] sm:$0xf]  ;;  %p422_p5 = scmp.lt.s32.totalorder %s3909_s10, 1 }
  0x5f   : > { %3469 = vmatprep.subr.msk.mxu0 %vm946_vm0, %v3118_v0  ;;  %3495 = vmatprep.subr.msk.mxu1 %vm946_vm0, %v846_v1  ;;  %s4094_s18 = sshll.u32 %s3905_s30, 3  ;;  %v4099_v2 = vld [vmem:[%s5277_s6 + $0x8] sm:$0xf]  ;;  %v4109_v3 = vld [vmem:[%s5277_s6 + $0xc] sm:$0xf]  ;;  %s5299_s0 = sld [smem:[#allocation34_spill]] }
  0x60   : > { %3470 = vmatpush3.msk.msra.mxu0 %vm946_vm0, %v3118_v0  ;;  %s5353_s10 = smov (!%p422_p5, %s3909_s10), 1  ;;  %3496 = vmatpush3.msk.msra.mxu1 %vm946_vm0, %v846_v1  ;;  %s450_s23 = sld [smem:[#allocation3 + %s4094_s18]]  ;;  %vm475_vm1 = vcmask 31744   ;;  %vm478_vm2 = vcmask 27648   ;;  %vm873_vm3 = vcmask 1045504   ;;  %vm2626_vm4 = vcmask 48128  }
  0x61   : > { %3521 = vmatprep.subr.msk.mxu0 %vm946_vm0, %v4099_v2  ;;  %3547 = vmatprep.subr.msk.mxu1 %vm946_vm0, %v4109_v3  ;;  %s480_s24 = sadd.s32 1, %s4094_s18  ;;  %s3729_s26 = smul.u32 192, %s5353_s10  ;;  %vm2878_vm5 = vcmask 64512  }
  0x62   : > { %s451_s27 = sld [smem:[#allocation5 + %s4094_s18]]  ;;  %s4121_s29 = sadd.s32 2, %s4094_s18 }
  0x63   : > { %s452_s28 = sld [smem:[#allocation7 + %s4094_s18]]  ;;  %s4132_s16 = sadd.s32 3, %s4094_s18 }
  0x64   : > { %s453_s15 = sld [smem:[#allocation8 + %s4094_s18]]  ;;  %s4137_s22 = sadd.s32 4, %s4094_s18 }
  0x65   : > { %s4126_s14 = scalar_lea.vmem %s5299_s0, %s3729_s26  ;;  %s4129_s17 = sld [smem:[#allocation3 + %s480_s24]] }
  0x66   : > { %s4134_s30 = sld [smem:[#allocation5 + %s480_s24]]  ;;  %s454_s2 = smul.u32 24, %s450_s23 }
  0x67   : > { %s483_s3 = sld [smem:[#allocation7 + %s480_s24]]  ;;  %p430_p8 = scmp.lt.s32.totalorder %s4094_s18, 15 }
  0x68   : > { %s463_s4 = smul.u32 24, %s451_s27  ;;  %s4139_s5 = sld [smem:[#allocation8 + %s480_s24]] }
  0x69   : > { %s455_s26 = scalar_lea.vmem %s4126_s14, %s454_s2  ;;  %v459_v4 = vstv %s452_s28  ;;  %s4143_s19 = sld [smem:[#allocation3 + %s4121_s29]] }
  0x6a   : > { %v456_v5 = vld [vmem:[%s455_s26] sm:$0xff]  ;;  %v457_v6 = vld [vmem:[%s455_s26 + $0x8] sm:$0xff]  ;;  %s464_s20 = scalar_lea.vmem %s4126_s14, %s463_s4  ;;  %v468_v7 = vstv %s453_s15  ;;  %v458_v8 = vld [vmem:[%s455_s26 + $0x10] sm:$0xf]  ;;  %s4147_s0 = sld [smem:[#allocation5 + %s4121_s29]] }
  0x6b   : > { %v460_v9 = vmul.f32 %v459_v4, %v456_v5  ;;  %v461_v10 = vmul.f32 %v459_v4, %v457_v6  ;;  %v465_v11 = vld [vmem:[%s464_s20] sm:$0xff]  ;;  %v466_v12 = vld [vmem:[%s464_s20 + $0x8] sm:$0xff]  ;;  %v462_v13 = vmul.f32 %v459_v4, %v458_v8  ;;  %v467_v14 = vld [vmem:[%s464_s20 + $0x10] sm:$0xf]  ;;  %s485_s2 = smul.u32 24, %s4129_s17  ;;  %s4151_s23 = sld [smem:[#allocation7 + %s4121_s29]] }
  0x6c   : > { %v469_v15 = vmul.f32 %v468_v7, %v465_v11  ;;  %v470_v16 = vmul.f32 %v468_v7, %v466_v12  ;;  %v471_v17 = vmul.f32 %v468_v7, %v467_v14  ;;  %s494_s4 = smul.u32 24, %s4134_s30  ;;  %s4155_s24 = sld [smem:[#allocation8 + %s4121_s29]]  ;;  %v4239_v14 = vld [vmem:[%s5277_s6 + $0x14] sm:$0xf] }
  0x6d   : > { %s486_s27 = scalar_lea.vmem %s4126_s14, %s485_s2  ;;  %v490_v18 = vstv %s483_s3  ;;  %s4159_s28 = sld [smem:[#allocation3 + %s4132_s16]] }
  0x6e   : > { %v472_v19 = vadd.f32 %v469_v15, %v460_v9  ;;  %v473_v20 = vadd.f32 %v470_v16, %v461_v10  ;;  %v474_v21 = vadd.f32 %v471_v17, %v462_v13  ;;  %v487_v22 = vld [vmem:[%s486_s27] sm:$0xff]  ;;  %v488_v23 = vld [vmem:[%s486_s27 + $0x8] sm:$0xff]  ;;  %s495_s15 = scalar_lea.vmem %s4126_s14, %s494_s4  ;;  %v499_v24 = vstv %s4139_s5  ;;  %v489_v25 = vld [vmem:[%s486_s27 + $0x10] sm:$0xf]  ;;  %s4164_s17 = sld [smem:[#allocation5 + %s4132_s16]] }
  0x6f   : > { %v491_v26 = vmul.f32 %v490_v18, %v487_v22  ;;  %v492_v27 = vmul.f32 %v490_v18, %v488_v23  ;;  %v496_v28 = vld [vmem:[%s495_s15] sm:$0xff]  ;;  %v497_v29 = vld [vmem:[%s495_s15 + $0x8] sm:$0xff]  ;;  %v493_v30 = vmul.f32 %v490_v18, %v489_v25  ;;  %v498_v31 = vld [vmem:[%s495_s15 + $0x10] sm:$0xf]  ;;  %s515_s3 = smul.u32 24, %s4143_s19  ;;  %s4168_s29 = sld [smem:[#allocation7 + %s4132_s16]] }
  0x70   : > { %476 = vst.msk [vmem:[#allocation2] sm:$0xff] %vm475_vm1, %v472_v19  ;;  %477 = vst.msk [vmem:[#allocation2 + $0x8] sm:$0xff] %vm475_vm1, %v473_v20  ;;  %v500_v32 = vmul.f32 %v499_v24, %v496_v28  ;;  %v501_v33 = vmul.f32 %v499_v24, %v497_v29  ;;  %v502_v34 = vmul.f32 %v499_v24, %v498_v31  ;;  %s524_s5 = smul.u32 24, %s4147_s0  ;;  %s4175_s30 = sld [smem:[#allocation8 + %s4132_s16]]  ;;  %v4234_v13 = vld [vmem:[%s5277_s6 + $0x10] sm:$0xf] }
  0x71   : > { %479 = vst.msk [vmem:[#allocation2 + $0x10] sm:$0xf] %vm478_vm2, %v474_v21  ;;  %s516_s26 = scalar_lea.vmem %s4126_s14, %s515_s3  ;;  %v520_v35 = vstv %s4151_s23  ;;  %s4180_s19 = sld [smem:[#allocation3 + %s4137_s22]] }
  0x72   : > { %v503_v36 = vadd.f32 %v500_v32, %v491_v26  ;;  %v504_v37 = vadd.f32 %v501_v33, %v492_v27  ;;  %v505_v38 = vadd.f32 %v502_v34, %v493_v30  ;;  %v517_v39 = vld [vmem:[%s516_s26] sm:$0xff]  ;;  %v518_v40 = vld [vmem:[%s516_s26 + $0x8] sm:$0xff]  ;;  %s525_s20 = scalar_lea.vmem %s4126_s14, %s524_s5  ;;  %v529_v41 = vstv %s4155_s24  ;;  %v519_v42 = vld [vmem:[%s516_s26 + $0x10] sm:$0xf]  ;;  %s4185_s2 = sld [smem:[#allocation5 + %s4137_s22]] }
  0x73   : > { %v521_v43 = vmul.f32 %v520_v35, %v517_v39  ;;  %v522_v44 = vmul.f32 %v520_v35, %v518_v40  ;;  %v526_v45 = vld [vmem:[%s525_s20] sm:$0xff]  ;;  %v527_v46 = vld [vmem:[%s525_s20 + $0x8] sm:$0xff]  ;;  %v523_v47 = vmul.f32 %v520_v35, %v519_v42  ;;  %v528_v48 = vld [vmem:[%s525_s20 + $0x10] sm:$0xf]  ;;  %s545_s0 = smul.u32 24, %s4159_s28  ;;  %s4189_s16 = sld [smem:[#allocation7 + %s4137_s22]] }
  0x74   : > { %507 = vst.msk [vmem:[#allocation2 + $0x18] sm:$0xff] %vm475_vm1, %v503_v36  ;;  %508 = vst.msk [vmem:[#allocation2 + $0x20] sm:$0xff] %vm475_vm1, %v504_v37  ;;  %v530_v49 = vmul.f32 %v529_v41, %v526_v45  ;;  %v531_v50 = vmul.f32 %v529_v41, %v527_v46  ;;  %v532_v51 = vmul.f32 %v529_v41, %v528_v48  ;;  %s554_s23 = smul.u32 24, %s4164_s17  ;;  %s4196_s4 = sld [smem:[#allocation8 + %s4137_s22]] }
  0x75   : > { %509 = vst.msk [vmem:[#allocation2 + $0x28] sm:$0xf] %vm478_vm2, %v505_v38  ;;  %s546_s24 = scalar_lea.vmem %s4126_s14, %s545_s0  ;;  %v550_v52 = vstv %s4168_s29  ;;  %s4201_s27 = sadd.s32 5, %s4094_s18 }
  0x76   : > { %v533_v53 = vadd.f32 %v530_v49, %v521_v43  ;;  %v534_v54 = vadd.f32 %v531_v50, %v522_v44  ;;  %v535_v55 = vadd.f32 %v532_v51, %v523_v47  ;;  %v547_v56 = vld [vmem:[%s546_s24] sm:$0xff]  ;;  %v548_v57 = vld [vmem:[%s546_s24 + $0x8] sm:$0xff]  ;;  %s555_s28 = scalar_lea.vmem %s4126_s14, %s554_s23  ;;  %v559_v58 = vstv %s4175_s30  ;;  %v549_v59 = vld [vmem:[%s546_s24 + $0x10] sm:$0xf]  ;;  %s4206_s15 = sld [smem:[#allocation3 + %s4201_s27]] }
  0x77   : > { %v4208_v60 = vld [vmem:[#allocation2] sm:$0xff]  ;;  %v4210_v61 = vld [vmem:[#allocation2 + $0x8] sm:$0xff]  ;;  %v551_v63 = vmul.f32 %v550_v52, %v547_v56  ;;  %v552_v0 = vmul.f32 %v550_v52, %v548_v57  ;;  %s575_s22 = smul.u32 24, %s4180_s19  ;;  %s4216_s17 = sld [smem:[#allocation5 + %s4201_s27]]  ;;  %v553_v8 = vmul.f32 %v550_v52, %v549_v59  ;;  %v558_v11 = vld [vmem:[%s555_s28 + $0x10] sm:$0xf] }
  0x78   : > { %v4212_v62 = vld [vmem:[#allocation2 + $0x10] sm:$0xf]  ;;  %v874_v1 = vrot.slane %v4208_v60, 2  ;;  %v875_v4 = vrot.slane %v4210_v61, 2  ;;  %3497 = vmatprep.mubr.msk.f32.mxu1 %vm475_vm1, %v4208_v60  ;;  %537 = vst.msk [vmem:[#allocation2 + $0x30] sm:$0xff] %vm475_vm1, %v533_v53  ;;  %538 = vst.msk [vmem:[#allocation2 + $0x38] sm:$0xff] %vm475_vm1, %v534_v54  ;;  %v562_v17 = vmul.f32 %v559_v58, %v558_v11 }
  0x79   : > { %v877_v5 = vrot.slane %v4212_v62, 2  ;;  %539 = vst.msk [vmem:[#allocation2 + $0x40] sm:$0xf] %vm478_vm2, %v535_v55  ;;  %v556_v6 = vld [vmem:[%s555_s28] sm:$0xff]  ;;  %v557_v7 = vld [vmem:[%s555_s28 + $0x8] sm:$0xff]  ;;  %3498 = vmatmul.mubr.msk.f32.vlgmr.msra.gmra.mxu1 %vm475_vm1, %v4210_v61  ;;  %s576_s3 = scalar_lea.vmem %s4126_s14, %s575_s22  ;;  %v580_v12 = vstv %s4189_s16  ;;  %s584_s29 = smul.u32 24, %s4185_s2 }
  0x7a   : > { %v560_v9 = vmul.f32 %v559_v58, %v556_v6  ;;  %v561_v10 = vmul.f32 %v559_v58, %v557_v7  ;;  %v876_v15 = vsel %vm873_vm3, %v874_v1, %v875_v4  ;;  %3548 = vmatpush3.msk.msra.mxu1 %vm946_vm0, %v4109_v3  ;;  %v577_v18 = vld [vmem:[%s576_s3] sm:$0xff]  ;;  %v578_v19 = vld [vmem:[%s576_s3 + $0x8] sm:$0xff]  ;;  %v589_v20 = vstv %s4196_s4  ;;  %v579_v21 = vld [vmem:[%s576_s3 + $0x10] sm:$0xf]  ;;  %s4247_s20 = sld [smem:[#allocation7 + %s4201_s27]]  ;;  %s4250_s2 = sadd.s32 6, %s4094_s18 }
  0x7b   : > { %v878_v16 = vsel %vm873_vm3, %v875_v4, %v877_v5  ;;  %3471 = vmatprep.mubr.msk.f32.mxu0 %vm475_vm1, %v876_v15  ;;  %v4253_v22 = vld [vmem:[#allocation2 + $0x18] sm:$0xff]  ;;  %v4255_v23 = vld [vmem:[#allocation2 + $0x20] sm:$0xff]  ;;  %v581_v26 = vmul.f32 %v580_v12, %v577_v18  ;;  %v582_v27 = vmul.f32 %v580_v12, %v578_v19  ;;  %s585_s0 = scalar_lea.vmem %s4126_s14, %s584_s29  ;;  %s4261_s16 = sld [smem:[#allocation8 + %s4201_s27]]  ;;  %v565_v31 = vadd.f32 %v562_v17, %v553_v8 }
  0x7c   : > { %v4257_v24 = vld [vmem:[#allocation2 + $0x28] sm:$0xf]  ;;  %v563_v3 = vadd.f32 %v560_v9, %v551_v63  ;;  %v564_v25 = vadd.f32 %v561_v10, %v552_v0  ;;  %3472 = vmatmul.mubr.msk.f32.vlgmr.msra.gmra.mxu0 %vm475_vm1, %v878_v16  ;;  %v879_v28 = vrot.slane %v4253_v22, 2  ;;  %v880_v29 = vrot.slane %v4255_v23, 2  ;;  %3500 = vmatprep.mubr.msk.f32.mxu1 %vm475_vm1, %v4253_v22  ;;  %v586_v32 = vld [vmem:[%s585_s0] sm:$0xff]  ;;  %s605_s23 = smul.u32 24, %s4206_s15 }
  0x7d   : > { %v882_v30 = vrot.slane %v4257_v24, 2  ;;  %v587_v33 = vld [vmem:[%s585_s0 + $0x8] sm:$0xff]  ;;  %3522 = vmatpush3.msk.msra.mxu0 %vm946_vm0, %v4099_v2  ;;  %3501 = vmatmul.mubr.msk.f32.gmra.mxu1 %vm475_vm1, %v4255_v23  ;;  %v590_v34 = vmul.f32 %v589_v20, %v586_v32  ;;  %v583_v36 = vmul.f32 %v580_v12, %v579_v21  ;;  %v588_v37 = vld [vmem:[%s585_s0 + $0x10] sm:$0xf]  ;;  %s614_s4 = smul.u32 24, %s4216_s17  ;;  %s4278_s24 = sld [smem:[#allocation3 + %s4250_s2]] }
  0x7e   : > { %567 = vst.msk [vmem:[#allocation2 + $0x48] sm:$0xff] %vm475_vm1, %v563_v3  ;;  %568 = vst.msk [vmem:[#allocation2 + $0x50] sm:$0xff] %vm475_vm1, %v564_v25  ;;  %v591_v35 = vmul.f32 %v589_v20, %v587_v33  ;;  %v881_v38 = vsel %vm873_vm3, %v879_v28, %v880_v29  ;;  %v592_v39 = vmul.f32 %v589_v20, %v588_v37  ;;  %s606_s27 = scalar_lea.vmem %s4126_s14, %s605_s23  ;;  %s4285_s28 = sld [smem:[#allocation5 + %s4250_s2]]  ;;  %3573 = vmatprep.subr.msk.mxu0 %vm946_vm0, %v4234_v13 }
  0x7f   : > { %v883_v2 = vsel %vm873_vm3, %v880_v29, %v882_v30  ;;  %569 = vst.msk [vmem:[#allocation2 + $0x58] sm:$0xf] %vm478_vm2, %v565_v31  ;;  %3599 = vmatprep.subr.msk.mxu1 %vm946_vm0, %v4239_v14  ;;  %3474 = vmatprep.mubr.msk.f32.mxu0 %vm475_vm1, %v881_v38  ;;  %v4292_v40 = vld [vmem:[#allocation2 + $0x30] sm:$0xff]  ;;  %v4294_v41 = vld [vmem:[#allocation2 + $0x38] sm:$0xff]  ;;  %v593_v43 = vadd.f32 %v590_v34, %v581_v26  ;;  %s615_s15 = scalar_lea.vmem %s4126_s14, %s614_s4  ;;  %s4300_s22 = sld [smem:[#allocation7 + %s4250_s2]]  ;;  %v607_v49 = vld [vmem:[%s606_s27] sm:$0xff] }
  0x80   : > { %v4296_v42 = vld [vmem:[#allocation2 + $0x40] sm:$0xf]  ;;  %v594_v44 = vadd.f32 %v591_v35, %v582_v27  ;;  %3475 = vmatmul.mubr.msk.f32.gmra.mxu0 %vm475_vm1, %v883_v2  ;;  %v884_v45 = vrot.slane %v4292_v40, 2  ;;  %v885_v46 = vrot.slane %v4294_v41, 2  ;;  %3503 = vmatprep.mubr.msk.f32.mxu1 %vm475_vm1, %v4292_v40  ;;  %v595_v48 = vadd.f32 %v592_v39, %v583_v36  ;;  %v608_v50 = vld [vmem:[%s606_s27 + $0x8] sm:$0xff]  ;;  %s4315_s17 = sld [smem:[#allocation8 + %s4250_s2]] }
  0x81   : > { %v887_v47 = vrot.slane %v4296_v42, 2  ;;  %v616_v51 = vld [vmem:[%s615_s15] sm:$0xff]  ;;  %3504 = vmatmul.mubr.msk.f32.gmra.mxu1 %vm475_vm1, %v4294_v41  ;;  %597 = vst.msk [vmem:[#allocation2 + $0x60] sm:$0xff] %vm475_vm1, %v593_v43  ;;  %v610_v52 = vstv %s4247_s20  ;;  %v617_v53 = vld [vmem:[%s615_s15 + $0x8] sm:$0xff]  ;;  %v619_v54 = vstv %s4261_s16  ;;  %s660_s3 = sadd.s32 7, %s4094_s18  ;;  %s4328_s5 = sadd.s32 8, %s4094_s18 }
  0x82   : > { %598 = vst.msk [vmem:[#allocation2 + $0x68] sm:$0xff] %vm475_vm1, %v594_v44  ;;  %v609_v55 = vld [vmem:[%s606_s27 + $0x10] sm:$0xf]  ;;  %v4319_v56 = vsel %vm873_vm3, %v884_v45, %v885_v46  ;;  %v611_v58 = vmul.f32 %v610_v52, %v607_v49  ;;  %v612_v59 = vmul.f32 %v610_v52, %v608_v50  ;;  %s4325_s29 = sld [smem:[#allocation3 + %s660_s3]]  ;;  %v620_v0 = vmul.f32 %v619_v54, %v616_v51  ;;  %s4382_s27 = sadd.s32 9, %s4094_s18 }
  0x83   : > { %v4322_v57 = vsel %vm873_vm3, %v885_v46, %v887_v47  ;;  %599 = vst.msk [vmem:[#allocation2 + $0x70] sm:$0xf] %vm478_vm2, %v595_v48  ;;  %v618_v63 = vld [vmem:[%s615_s15 + $0x10] sm:$0xf]  ;;  %3477 = vmatprep.mubr.msk.f32.mxu0 %vm475_vm1, %v4319_v56  ;;  %v621_v1 = vmul.f32 %v619_v54, %v617_v53  ;;  %v613_v4 = vmul.f32 %v610_v52, %v609_v55  ;;  %s635_s30 = smul.u32 24, %s4278_s24  ;;  %s4333_s26 = sld [smem:[#allocation5 + %s660_s3]] }
  0x84   : > { %v622_v5 = vmul.f32 %v619_v54, %v618_v63  ;;  %3478 = vmatmul.mubr.msk.f32.gmra.mxu0 %vm475_vm1, %v4322_v57  ;;  %s644_s19 = smul.u32 24, %s4285_s28  ;;  %s4342_s20 = sld [smem:[#allocation7 + %s660_s3]]  ;;  %v623_v11 = vadd.f32 %v620_v0, %v611_v58 }
  0x85   : > { %v4337_v6 = vld [vmem:[#allocation2 + $0x48] sm:$0xff]  ;;  %v4339_v7 = vld [vmem:[#allocation2 + $0x50] sm:$0xff]  ;;  %v624_v12 = vadd.f32 %v621_v1, %v612_v59  ;;  %s636_s2 = scalar_lea.vmem %s4126_s14, %s635_s30  ;;  %s4351_s0 = sld [smem:[#allocation8 + %s660_s3]]  ;;  %v640_v19 = vstv %s4300_s22 }
  0x86   : > { %v889_v8 = vrot.slane %v4337_v6, 2  ;;  %v890_v9 = vrot.slane %v4339_v7, 2  ;;  %3506 = vmatprep.mubr.msk.f32.mxu1 %vm475_vm1, %v4337_v6  ;;  %v4348_v10 = vld [vmem:[#allocation2 + $0x58] sm:$0xf]  ;;  %v625_v16 = vadd.f32 %v622_v5, %v613_v4  ;;  %v637_v17 = vld [vmem:[%s636_s2] sm:$0xff]  ;;  %v638_v18 = vld [vmem:[%s636_s2 + $0x8] sm:$0xff]  ;;  %s645_s16 = scalar_lea.vmem %s4126_s14, %s644_s19  ;;  %v649_v28 = vstv %s4315_s17 }
  0x87   : > { %v892_v15 = vrot.slane %v4348_v10, 2  ;;  %3507 = vmatmul.mubr.msk.f32.gmra.mxu1 %vm475_vm1, %v4339_v7  ;;  %v639_v20 = vld [vmem:[%s636_s2 + $0x10] sm:$0xf]  ;;  %s4359_s23 = sld [smem:[#allocation3 + %s4328_s5]]  ;;  %627 = vst.msk [vmem:[#allocation2 + $0x78] sm:$0xff] %vm475_vm1, %v623_v11  ;;  %628 = vst.msk [vmem:[#allocation2 + $0x80] sm:$0xff] %vm475_vm1, %v624_v12  ;;  %v641_v3 = vmul.f32 %v640_v19, %v637_v17  ;;  %v642_v25 = vmul.f32 %v640_v19, %v638_v18 }
  0x88   : > { %v4362_v21 = vsel %vm873_vm3, %v889_v8, %v890_v9  ;;  %v646_v26 = vld [vmem:[%s645_s16] sm:$0xff]  ;;  %v647_v27 = vld [vmem:[%s645_s16 + $0x8] sm:$0xff]  ;;  %v648_v29 = vld [vmem:[%s645_s16 + $0x10] sm:$0xf]  ;;  %s4368_s4 = sld [smem:[#allocation5 + %s4328_s5]]  ;;  %v643_v35 = vmul.f32 %v640_v19, %v639_v20  ;;  %s665_s24 = smul.u32 24, %s4325_s29 }
  0x89   : > { %3480 = vmatprep.mubr.msk.f32.mxu0 %vm475_vm1, %v4362_v21  ;;  %v4373_v30 = vsel %vm873_vm3, %v890_v9, %v892_v15  ;;  %v4375_v31 = vld [vmem:[#allocation2 + $0x60] sm:$0xff]  ;;  %v4377_v32 = vld [vmem:[#allocation2 + $0x68] sm:$0xff]  ;;  %629 = vst.msk [vmem:[#allocation2 + $0x88] sm:$0xf] %vm478_vm2, %v625_v16  ;;  %v650_v33 = vmul.f32 %v649_v28, %v646_v26  ;;  %v651_v34 = vmul.f32 %v649_v28, %v647_v27  ;;  %s674_s28 = smul.u32 24, %s4333_s26  ;;  %s4394_s15 = sld [smem:[#allocation7 + %s4328_s5]] }
  0x8a   : > { %3481 = vmatmul.mubr.msk.f32.gmra.mxu0 %vm475_vm1, %v4373_v30  ;;  %v894_v36 = vrot.slane %v4375_v31, 2  ;;  %v895_v37 = vrot.slane %v4377_v32, 2  ;;  %3509 = vmatprep.mubr.msk.f32.mxu1 %vm475_vm1, %v4375_v31  ;;  %v4390_v38 = vld [vmem:[#allocation2 + $0x70] sm:$0xf]  ;;  %v652_v2 = vmul.f32 %v649_v28, %v648_v29  ;;  %s666_s22 = scalar_lea.vmem %s4126_s14, %s665_s24  ;;  %v670_v45 = vstv %s4342_s20  ;;  %s4402_s17 = sld [smem:[#allocation8 + %s4328_s5]] }
  0x8b   : > { %v897_v39 = vrot.slane %v4390_v38, 2  ;;  %3510 = vmatmul.mubr.msk.f32.gmra.mxu1 %vm475_vm1, %v4377_v32  ;;  %v653_v43 = vadd.f32 %v650_v33, %v641_v3  ;;  %v654_v44 = vadd.f32 %v651_v34, %v642_v25  ;;  %v667_v48 = vld [vmem:[%s666_s22] sm:$0xff]  ;;  %v668_v49 = vld [vmem:[%s666_s22 + $0x8] sm:$0xff]  ;;  %s675_s3 = scalar_lea.vmem %s4126_s14, %s674_s28  ;;  %v679_v50 = vstv %s4351_s0  ;;  %v669_v51 = vld [vmem:[%s666_s22 + $0x10] sm:$0xf]  ;;  %s4410_s29 = sld [smem:[#allocation3 + %s4382_s27]] }
  0x8c   : > { %v4405_v46 = vsel %vm873_vm3, %v894_v36, %v895_v37  ;;  %v655_v47 = vadd.f32 %v652_v2, %v643_v35  ;;  %v671_v53 = vmul.f32 %v670_v45, %v667_v48  ;;  %v672_v54 = vmul.f32 %v670_v45, %v668_v49  ;;  %v676_v55 = vld [vmem:[%s675_s3] sm:$0xff]  ;;  %v677_v58 = vld [vmem:[%s675_s3 + $0x8] sm:$0xff]  ;;  %v678_v63 = vld [vmem:[%s675_s3 + $0x10] sm:$0xf]  ;;  %s4421_s30 = sld [smem:[#allocation5 + %s4382_s27]] }
  0x8d   : > { %3483 = vmatprep.mubr.msk.f32.mxu0 %vm475_vm1, %v4405_v46  ;;  %v4415_v52 = vsel %vm873_vm3, %v895_v37, %v897_v39  ;;  %657 = vst.msk [vmem:[#allocation2 + $0x90] sm:$0xff] %vm475_vm1, %v653_v43  ;;  %658 = vst.msk [vmem:[#allocation2 + $0x98] sm:$0xff] %vm475_vm1, %v654_v44  ;;  %v673_v59 = vmul.f32 %v670_v45, %v669_v51  ;;  %s695_s5 = smul.u32 24, %s4359_s23  ;;  %v680_v0 = vmul.f32 %v679_v50, %v676_v55  ;;  %s4447_s2 = sld [smem:[#allocation7 + %s4382_s27]] }
  0x8e   : > { %3484 = vmatmul.mubr.msk.f32.gmra.mxu0 %vm475_vm1, %v4415_v52  ;;  %659 = vst.msk [vmem:[#allocation2 + $0xa0] sm:$0xf] %vm478_vm2, %v655_v47  ;;  %v681_v1 = vmul.f32 %v679_v50, %v677_v58  ;;  %v682_v4 = vmul.f32 %v679_v50, %v678_v63  ;;  %s704_s26 = smul.u32 24, %s4368_s4  ;;  %v4427_v5 = vld [vmem:[#allocation2 + $0x78] sm:$0xff]  ;;  %v4429_v8 = vld [vmem:[#allocation2 + $0x80] sm:$0xff]  ;;  %s4455_s0 = sld [smem:[#allocation8 + %s4382_s27]] }
  0x8f   : > { %v899_v9 = vrot.slane %v4427_v5, 2  ;;  %v900_v11 = vrot.slane %v4429_v8, 2  ;;  %3512 = vmatprep.mubr.msk.f32.mxu1 %vm475_vm1, %v4427_v5  ;;  %v683_v15 = vadd.f32 %v680_v0, %v671_v53  ;;  %s4438_s19 = scalar_lea.vmem %s4126_s14, %s695_s5  ;;  %s4467_s4 = sadd.s32 10, %s4094_s18  ;;  %v1277_v27 = vrot.slane %v4208_v60, 4 }
  0x90   : > { %v4435_v12 = vld [vmem:[#allocation2 + $0x88] sm:$0xf]  ;;  %v684_v16 = vadd.f32 %v681_v1, %v672_v54  ;;  %3513 = vmatmul.mubr.msk.f32.gmra.mxu1 %vm475_vm1, %v4429_v8  ;;  %v685_v18 = vadd.f32 %v682_v4, %v673_v59  ;;  %s4444_s20 = scalar_lea.vmem %s4126_s14, %s704_s26  ;;  %v697_v3 = vld [vmem:[%s4438_s19] sm:$0xff]  ;;  %v1278_v28 = vrot.slane %v4210_v61, 4  ;;  %v700_v29 = vstv %s4394_s15  ;;  %s4481_s24 = sld [smem:[#allocation3 + %s4467_s4]] }
  0x91   : > { %v902_v17 = vrot.slane %v4435_v12, 2  ;;  %v4450_v19 = vsel %vm873_vm3, %v899_v9, %v900_v11  ;;  %687 = vst.msk [vmem:[#allocation2 + $0xa8] sm:$0xff] %vm475_vm1, %v683_v15  ;;  %s725_s16 = smul.u32 24, %s4410_s29  ;;  %v706_v33 = vld [vmem:[%s4444_s20] sm:$0xff]  ;;  %v709_v34 = vstv %s4402_s17  ;;  %v698_v60 = vld [vmem:[%s4438_s19 + $0x8] sm:$0xff]  ;;  %v1280_v61 = vrot.slane %v4212_v62, 4 }
  0x92   : > { %688 = vst.msk [vmem:[#allocation2 + $0xb0] sm:$0xff] %vm475_vm1, %v684_v16  ;;  %3486 = vmatprep.mubr.msk.f32.mxu0 %vm475_vm1, %v4450_v19  ;;  %s734_s23 = smul.u32 24, %s4421_s30  ;;  %v1282_v39 = vrot.slane %v4253_v22, 4  ;;  %v701_v43 = vmul.f32 %v700_v29, %v697_v3  ;;  %v707_v44 = vld [vmem:[%s4444_s20 + $0x8] sm:$0xff]  ;;  %v1283_v47 = vrot.slane %v4255_v23, 4  ;;  %v710_v49 = vmul.f32 %v709_v34, %v706_v33  ;;  %s4509_s15 = sld [smem:[#allocation5 + %s4467_s4]] }
  0x93   : > { %v4461_v20 = vsel %vm873_vm3, %v900_v11, %v902_v17  ;;  %689 = vst.msk [vmem:[#allocation2 + $0xb8] sm:$0xf] %vm478_vm2, %v685_v18  ;;  %s4491_s27 = scalar_lea.vmem %s4126_s14, %s725_s16  ;;  %v699_v62 = vld [vmem:[%s4438_s19 + $0x10] sm:$0xf]  ;;  %v1279_v50 = vsel %vm946_vm0, %v1277_v27, %v1278_v28  ;;  %v702_v51 = vmul.f32 %v700_v29, %v698_v60  ;;  %s4521_s22 = sld [smem:[#allocation7 + %s4467_s4]]  ;;  %v711_v0 = vmul.f32 %v709_v34, %v707_v44 }
  0x94   : > { %3487 = vmatmul.mubr.msk.f32.gmra.mxu0 %vm475_vm1, %v4461_v20  ;;  %v4471_v25 = vld [vmem:[#allocation2 + $0x90] sm:$0xff]  ;;  %v4473_v26 = vld [vmem:[#allocation2 + $0x98] sm:$0xff]  ;;  %s4494_s28 = scalar_lea.vmem %s4126_s14, %s734_s23  ;;  %v727_v53 = vld [vmem:[%s4491_s27] sm:$0xff]  ;;  %s4524_s17 = sadd.s32 11, %s4094_s18  ;;  %v713_v63 = vadd.f32 %v710_v49, %v701_v43  ;;  %v730_v1 = vstv %s4447_s2  ;;  %v739_v9 = vstv %s4455_s0  ;;  %v703_v17 = vmul.f32 %v700_v29, %v699_v62 }
  0x95   : > { %v904_v35 = vrot.slane %v4471_v25, 2  ;;  %v905_v36 = vrot.slane %v4473_v26, 2  ;;  %3515 = vmatprep.mubr.msk.f32.mxu1 %vm475_vm1, %v4471_v25  ;;  %v4487_v37 = vld [vmem:[#allocation2 + $0xa0] sm:$0xf]  ;;  %v708_v48 = vld [vmem:[%s4444_s20 + $0x10] sm:$0xf]  ;;  %v1281_v33 = vsel %vm946_vm0, %v1278_v28, %v1280_v61  ;;  %v1284_v61 = vsel %vm946_vm0, %v1282_v39, %v1283_v47 }
  0x96   : > { %v907_v2 = vrot.slane %v4487_v37, 2  ;;  %3516 = vmatmul.mubr.msk.f32.gmra.mxu1 %vm475_vm1, %v4473_v26  ;;  %v729_v54 = vld [vmem:[%s4491_s27 + $0x10] sm:$0xf]  ;;  %v736_v55 = vld [vmem:[%s4494_s28] sm:$0xff]  ;;  %s4536_s3 = sld [smem:[#allocation8 + %s4467_s4]]  ;;  %v712_v18 = vmul.f32 %v709_v34, %v708_v48  ;;  %v728_v3 = vld [vmem:[%s4491_s27 + $0x8] sm:$0xff] }
  0x97   : > { %v4503_v45 = vsel %vm873_vm3, %v904_v35, %v905_v36  ;;  %v738_v4 = vld [vmem:[%s4494_s28 + $0x10] sm:$0xf]  ;;  %s755_s29 = smul.u32 24, %s4481_s24  ;;  %717 = vst.msk [vmem:[#allocation2 + $0xc0] sm:$0xff] %vm475_vm1, %v713_v63  ;;  %v714_v35 = vadd.f32 %v711_v0, %v702_v51  ;;  %v737_v60 = vld [vmem:[%s4494_s28 + $0x8] sm:$0xff]  ;;  %s4553_s5 = sld [smem:[#allocation3 + %s4524_s17]]  ;;  %v733_v34 = vmul.f32 %v730_v1, %v729_v54  ;;  %v732_v62 = vmul.f32 %v730_v1, %v728_v3 }
  0x98   : > { %3489 = vmatprep.mubr.msk.f32.mxu0 %vm475_vm1, %v4503_v45  ;;  %v4514_v22 = vsel %vm873_vm3, %v905_v36, %v907_v2  ;;  %v4528_v58 = vld [vmem:[#allocation2 + $0xa8] sm:$0xff]  ;;  %v731_v36 = vmul.f32 %v730_v1, %v727_v53  ;;  %v740_v2 = vmul.f32 %v739_v9, %v736_v55  ;;  %v742_v43 = vmul.f32 %v739_v9, %v738_v4  ;;  %s4563_s26 = sld [smem:[#allocation5 + %s4524_s17]]  ;;  %s764_s19 = smul.u32 24, %s4509_s15  ;;  %v4581_v39 = vld [vmem:[%s5277_s6 + $0x1c] sm:$0xf] }
  0x99   : > { %3490 = vmatmul.mubr.msk.f32.gmra.mxu0 %vm475_vm1, %v4514_v22  ;;  %v4530_v59 = vld [vmem:[#allocation2 + $0xb0] sm:$0xff]  ;;  %v909_v11 = vrot.slane %v4528_v58, 2  ;;  %3518 = vmatprep.mubr.msk.f32.mxu1 %vm475_vm1, %v4528_v58  ;;  %s756_s30 = scalar_lea.vmem %s4126_s14, %s755_s29  ;;  %v1285_v44 = vrot.slane %v4257_v24, 4  ;;  %718 = vst.msk [vmem:[#allocation2 + $0xc8] sm:$0xff] %vm475_vm1, %v714_v35  ;;  %v741_v53 = vmul.f32 %v739_v9, %v737_v60  ;;  %v715_v24 = vadd.f32 %v712_v18, %v703_v17  ;;  %s4584_s0 = sld [smem:[#allocation7 + %s4524_s17]] }
  0x9a   : > { %v910_v15 = vrot.slane %v4530_v59, 2  ;;  %v4542_v16 = vld [vmem:[#allocation2 + $0xb8] sm:$0xf]  ;;  %3519 = vmatmul.mubr.msk.f32.gmra.mxu1 %vm475_vm1, %v4530_v59  ;;  %v757_v48 = vld [vmem:[%s756_s30] sm:$0xff]  ;;  %v758_v49 = vld [vmem:[%s756_s30 + $0x8] sm:$0xff]  ;;  %v743_v51 = vadd.f32 %v740_v2, %v731_v36  ;;  %v745_v54 = vadd.f32 %v742_v43, %v733_v34  ;;  %s3111_s16 = sshll.u32 %s5353_s10, 5  ;;  %v760_v1 = vstv %s4521_s22  ;;  %s765_s23 = scalar_lea.vmem %s4126_s14, %s764_s19 }
  0x9b   : > { %v912_v27 = vrot.slane %v4542_v16, 2  ;;  %3549 = vmatprep.mubr.msk.f32.mxu1 %vm475_vm1, %v4292_v40  ;;  %v759_v55 = vld [vmem:[%s756_s30 + $0x10] sm:$0xf]  ;;  %v1287_v63 = vrot.slane %v4292_v40, 4  ;;  %v1288_v0 = vrot.slane %v4294_v41, 4  ;;  %s4596_s4 = sld [smem:[#allocation8 + %s4524_s17]]  ;;  %v761_v40 = vmul.f32 %v760_v1, %v757_v48 }
  0x9c   : > { %v4557_v29 = vsel %vm873_vm3, %v909_v11, %v910_v15  ;;  %v769_v4 = vstv %s4536_s3  ;;  %747 = vst.msk [vmem:[#allocation2 + $0xd8] sm:$0xff] %vm475_vm1, %v743_v51  ;;  %v766_v9 = vld [vmem:[%s765_s23] sm:$0xff]  ;;  %v767_v11 = vld [vmem:[%s765_s23 + $0x8] sm:$0xff]  ;;  %s5355_s18 = smov (!%p430_p8, %s4094_s18), 15  ;;  %v763_v17 = vmul.f32 %v760_v1, %v759_v55  ;;  %v1286_v35 = vsel %vm946_vm0, %v1283_v47, %v1285_v44 }
  0x9d   : > { %3492 = vmatprep.mubr.msk.f32.mxu0 %vm475_vm1, %v4557_v29  ;;  %v4568_v28 = vsel %vm873_vm3, %v910_v15, %v912_v27  ;;  %719 = vst.msk [vmem:[#allocation2 + $0xd0] sm:$0xf] %vm478_vm2, %v715_v24  ;;  %749 = vst.msk [vmem:[#allocation2 + $0xe8] sm:$0xf] %vm478_vm2, %v745_v54  ;;  %v768_v15 = vld [vmem:[%s765_s23 + $0x10] sm:$0xf]  ;;  %v770_v18 = vmul.f32 %v769_v4, %v766_v9  ;;  %v771_v3 = vmul.f32 %v769_v4, %v767_v11 }
  0x9e   : > { %3493 = vmatmul.mubr.msk.f32.gmra.mxu0 %vm475_vm1, %v4568_v28  ;;  %3550 = vmatmul.mubr.msk.f32.vlgmr.msra.gmra.mxu1 %vm475_vm1, %v4294_v41  ;;  %v762_v41 = vmul.f32 %v760_v1, %v758_v49  ;;  %v772_v27 = vmul.f32 %v769_v4, %v768_v15  ;;  %s785_s28 = smul.u32 24, %s4553_s5  ;;  %v1290_v36 = vrot.slane %v4296_v42, 4  ;;  %s3110_s22 = sshll.u32 %s5355_s18, 1  ;;  %v4627_v60 = vsel %vm946_vm0, %v1287_v63, %v1288_v0 }
  0x9f   : > { %3523 = vmatprep.mubr.msk.f32.mxu0 %vm475_vm1, %v1279_v50  ;;  %3600 = vmatpush3.msk.msra.mxu1 %vm946_vm0, %v4239_v14  ;;  %v744_v50 = vadd.f32 %v741_v53, %v732_v62  ;;  %v4611_v14 = vld [vmem:[%s5277_s6 + $0x18] sm:$0xf]  ;;  %s794_s15 = smul.u32 24, %s4563_s26  ;;  %s4632_s3 = sadd.s32 %s3111_s16, %s3110_s22  ;;  %v1292_v42 = vrot.slane %v4337_v6, 4  ;;  %v1293_v47 = vrot.slane %v4339_v7, 4  ;;  %v790_v43 = vstv %s4584_s0 }
  0xa0   : > { %3552 = vmatprep.mubr.msk.f32.mxu1 %vm475_vm1, %v4337_v6  ;;  %3651 = vmatprep.subr.msk.mxu1 %vm946_vm0, %v4581_v39  ;;  %v774_v23 = vadd.f32 %v771_v3, %v762_v41  ;;  %s786_s17 = scalar_lea.vmem %s4126_s14, %s785_s28  ;;  %v4648_v62 = vsel %vm946_vm0, %v1288_v0, %v1290_v36  ;;  %v1295_v48 = vrot.slane %v4348_v10, 4  ;;  %v1297_v0 = vrot.slane %v4375_v31, 4  ;;  %v4697_v36 = vld [vmem:[#allocation2 + $0xc0] sm:$0xff]  ;;  %s3112_s30 = sshll.u32 %s4632_s3, 3 }
  0xa1   : > { %748 = vst.msk [vmem:[#allocation2 + $0xe0] sm:$0xff] %vm475_vm1, %v744_v50  ;;  %v787_v34 = vld [vmem:[%s786_s17] sm:$0xff]  ;;  %v788_v2 = vld [vmem:[%s786_s17 + $0x8] sm:$0xff]  ;;  %s795_s18 = scalar_lea.vmem %s4126_s14, %s794_s15  ;;  %v799_v51 = vstv %s4596_s4  ;;  %v1294_v63 = vsel %vm946_vm0, %v1292_v42, %v1293_v47  ;;  %v1298_v10 = vrot.slane %v4377_v32, 4  ;;  %v1302_v15 = vrot.slane %v4427_v5, 4  ;;  %s4916_s20 = scalar_lea.vmem %s5272_s1, %s3112_s30 }
  0xa2   : > { %3524 = vmatmul.mubr.msk.f32.vlgmr.msra.gmra.mxu0 %vm475_vm1, %v1281_v33  ;;  %v773_v33 = vadd.f32 %v770_v18, %v761_v40  ;;  %3553 = vmatmul.mubr.msk.f32.gmra.mxu1 %vm475_vm1, %v4339_v7  ;;  %778 = vst.msk [vmem:[#allocation2 + $0xf8] sm:$0xff] %vm475_vm1, %v774_v23  ;;  %v791_v6 = vmul.f32 %v790_v43, %v787_v34  ;;  %v796_v44 = vld [vmem:[%s795_s18] sm:$0xff]  ;;  %v797_v7 = vld [vmem:[%s795_s18 + $0x8] sm:$0xff]  ;;  %v798_v49 = vld [vmem:[%s795_s18 + $0x10] sm:$0xf]  ;;  %v1300_v40 = vrot.slane %v4390_v38, 4  ;;  %s5162_s4 = scalar_lea.vmem %s5280_s9, %s3112_s30 }
  0xa3   : > { %3574 = vmatpush3.msk.msra.mxu0 %vm946_vm0, %v4234_v13  ;;  %3526 = vmatprep.mubr.msk.f32.mxu0 %vm475_vm1, %v1284_v61  ;;  %v775_v13 = vadd.f32 %v772_v27, %v763_v17  ;;  %v789_v61 = vld [vmem:[%s786_s17 + $0x10] sm:$0xf]  ;;  %v792_v53 = vmul.f32 %v790_v43, %v788_v2  ;;  %v800_v54 = vmul.f32 %v799_v51, %v796_v44  ;;  %v1303_v17 = vrot.slane %v4429_v8, 4  ;;  %v4718_v34 = vld [vmem:[#allocation2 + $0xd8] sm:$0xff] }
  0xa4   : > { %3625 = vmatprep.subr.msk.mxu0 %vm946_vm0, %v4611_v14  ;;  %3555 = vmatprep.mubr.msk.f32.mxu1 %vm475_vm1, %v4375_v31  ;;  %777 = vst.msk [vmem:[#allocation2 + $0xf0] sm:$0xff] %vm475_vm1, %v773_v33  ;;  %v793_v24 = vmul.f32 %v790_v43, %v789_v61  ;;  %v801_v55 = vmul.f32 %v799_v51, %v797_v7  ;;  %v1305_v18 = vrot.slane %v4435_v12, 4  ;;  %v1307_v27 = vrot.slane %v4471_v25, 4 }
  0xa5   : > { %779 = vst.msk [vmem:[#allocation2 + $0x100] sm:$0xf] %vm478_vm2, %v775_v13  ;;  %v802_v1 = vmul.f32 %v799_v51, %v798_v49  ;;  %v803_v4 = vadd.f32 %v800_v54, %v791_v6  ;;  %v1296_v50 = vsel %vm946_vm0, %v1293_v47, %v1295_v48  ;;  %v4671_v11 = vsel %vm946_vm0, %v1297_v0, %v1298_v10  ;;  %v4714_v13 = vld [vmem:[#allocation2 + $0xc8] sm:$0xff] }
  0xa6   : > { %3527 = vmatmul.mubr.msk.f32.gmra.mxu0 %vm475_vm1, %v1286_v35  ;;  %3556 = vmatmul.mubr.msk.f32.gmra.mxu1 %vm475_vm1, %v4377_v32  ;;  %v804_v41 = vadd.f32 %v801_v55, %v792_v53  ;;  %v4683_v38 = vsel %vm946_vm0, %v1298_v10, %v1300_v40  ;;  %v4689_v3 = vsel %vm946_vm0, %v1302_v15, %v1303_v17  ;;  %v1308_v35 = vrot.slane %v4473_v26, 4  ;;  %v839_v48 = vld [vmem:[#allocation2 + $0xe8] sm:$0xf]  ;;  %v2609_v40 = vld [vmem:[%s4916_s20] sm:$0xff]  ;;  %v2612_v15 = vld [vmem:[%s4916_s20 + $0x18] sm:$0xff] }
  0xa7   : > { %3529 = vmatprep.mubr.msk.f32.mxu0 %vm475_vm1, %v4627_v60  ;;  %3558 = vmatprep.mubr.msk.f32.mxu1 %vm475_vm1, %v4427_v5  ;;  %807 = vst.msk [vmem:[#allocation2 + $0x108] sm:$0xff] %vm475_vm1, %v803_v4  ;;  %v805_v9 = vadd.f32 %v802_v1, %v793_v24  ;;  %v4702_v12 = vsel %vm946_vm0, %v1303_v17, %v1305_v18  ;;  %v1310_v33 = vrot.slane %v4487_v37, 4  ;;  %v1312_v42 = vrot.slane %v4528_v58, 4  ;;  %v2613_v17 = vld [vmem:[%s4916_s20 + $0x20] sm:$0xff]  ;;  %v2615_v18 = vld [vmem:[%s4916_s20 + $0x30] sm:$0xff] }
  0xa8   : > { %808 = vst.msk [vmem:[#allocation2 + $0x110] sm:$0xff] %vm475_vm1, %v804_v41  ;;  %v4708_v23 = vsel %vm946_vm0, %v1307_v27, %v1308_v35  ;;  %v1313_v47 = vrot.slane %v4530_v59, 4  ;;  %v1315_v2 = vrot.slane %v4542_v16, 4  ;;  %v4733_v61 = vld [vmem:[#allocation2 + $0xe0] sm:$0xff]  ;;  %v1884_v44 = vrot.slane %v4718_v34, 4  ;;  %v2610_v41 = vld [vmem:[%s4916_s20 + $0x8] sm:$0xff] }
  0xa9   : > { %809 = vst.msk [vmem:[#allocation2 + $0x118] sm:$0xf] %vm478_vm2, %v805_v9  ;;  %v4723_v37 = vsel %vm946_vm0, %v1308_v35, %v1310_v33  ;;  %v2625_v16 = vld [vmem:[%s5278_s7] sm:$0x3f]  ;;  %v1885_v7 = vrot.slane %v4733_v61, 4  ;;  %v1700_v51 = vrot.slane %v4718_v34, 2 }
  0xaa   : > { %3530 = vmatmul.mubr.msk.f32.gmra.mxu0 %vm475_vm1, %v4648_v62  ;;  %3559 = vmatmul.mubr.msk.f32.gmra.mxu1 %vm475_vm1, %v4429_v8  ;;  %v4729_v43 = vsel %vm946_vm0, %v1312_v42, %v1313_v47  ;;  %v4740_v6 = vsel %vm946_vm0, %v1313_v47, %v1315_v2  ;;  %v1701_v53 = vrot.slane %v4733_v61, 2  ;;  %v1887_v55 = vrot.slane %v839_v48, 4  ;;  %v2611_v9 = vld [vmem:[%s4916_s20 + $0x10] sm:$0xff]  ;;  %v2618_v27 = vld [vmem:[%s4916_s20 + $0x48] sm:$0xff]  ;;  %v2620_v33 = vld [vmem:[%s4916_s20 + $0x58] sm:$0xff] }
  0xab   : > { %3532 = vmatprep.mubr.msk.f32.mxu0 %vm475_vm1, %v1294_v63  ;;  %3561 = vmatprep.mubr.msk.f32.mxu1 %vm475_vm1, %v4471_v25  ;;  %v1703_v10 = vrot.slane %v839_v48, 2  ;;  %v2619_v35 = vld [vmem:[%s4916_s20 + $0x50] sm:$0xff] }
  0xac   : > { %v1702_v1 = vsel %vm873_vm3, %v1700_v51, %v1701_v53  ;;  %v4832_v4 = vsel %vm946_vm0, %v1885_v7, %v1887_v55  ;;  %v2623_v2 = vld [vmem:[%s4916_s20 + $0x70] sm:$0xff] }
  0xae   : > { %3533 = vmatmul.mubr.msk.f32.gmra.mxu0 %vm475_vm1, %v1296_v50  ;;  %3562 = vmatmul.mubr.msk.f32.gmra.mxu1 %vm475_vm1, %v4473_v26 }
  0xaf   : > { %3535 = vmatprep.mubr.msk.f32.mxu0 %vm475_vm1, %v4671_v11  ;;  %3564 = vmatprep.mubr.msk.f32.mxu1 %vm475_vm1, %v4528_v58 }
  0xb2   : > { %3536 = vmatmul.mubr.msk.f32.gmra.mxu0 %vm475_vm1, %v4683_v38  ;;  %3565 = vmatmul.mubr.msk.f32.gmra.mxu1 %vm475_vm1, %v4530_v59 }
  0xb3   : > { %3538 = vmatprep.mubr.msk.f32.mxu0 %vm475_vm1, %v4689_v3  ;;  %3567 = vmatprep.mubr.msk.f32.mxu1 %vm475_vm1, %v4697_v36 }
  0xb6   : > { %3539 = vmatmul.mubr.msk.f32.gmra.mxu0 %vm475_vm1, %v4702_v12  ;;  %3568 = vmatmul.mubr.msk.f32.gmra.mxu1 %vm475_vm1, %v4714_v13 }
  0xb7   : > { %3541 = vmatprep.mubr.msk.f32.mxu0 %vm475_vm1, %v4708_v23  ;;  %3570 = vmatprep.mubr.msk.f32.mxu1 %vm475_vm1, %v4718_v34 }
  0xba   : > { %3542 = vmatmul.mubr.msk.f32.gmra.mxu0 %vm475_vm1, %v4723_v37  ;;  %3571 = vmatmul.mubr.msk.f32.gmra.mxu1 %vm475_vm1, %v4733_v61 }
  0xbb   : > { %3544 = vmatprep.mubr.msk.f32.mxu0 %vm475_vm1, %v4729_v43  ;;  %3601 = vmatprep.mubr.msk.f32.mxu1 %vm475_vm1, %v4627_v60  ;;  %v3261_v60 = vld [vmem:[%s5277_s6 + $0x20] sm:$0xf] }
  0xbe   : > { %3545 = vmatmul.mubr.msk.f32.gmra.mxu0 %vm475_vm1, %v4740_v6  ;;  %3602 = vmatmul.mubr.msk.f32.vlgmr.msra.gmra.mxu1 %vm475_vm1, %v4648_v62 }
  0xbf   : > { %3575 = vmatprep.mubr.msk.f32.mxu0 %vm475_vm1, %v4319_v56  ;;  %3652 = vmatpush3.msk.msra.mxu1 %vm946_vm0, %v4581_v39  ;;  %v1879_v56 = vrot.slane %v4697_v36, 4  ;;  %v1696_v39 = vrot.slane %v4714_v13, 2 }
  0xc0   : > { %3604 = vmatprep.mubr.msk.f32.mxu1 %vm475_vm1, %v1294_v63  ;;  %3703 = vmatprep.subr.msk.mxu1 %vm873_vm3, %v2625_v16  ;;  %v4822_v63 = vsel %vm946_vm0, %v1884_v44, %v1885_v7 }
  0xc2   : > { %3576 = vmatmul.mubr.msk.f32.vlgmr.msra.gmra.mxu0 %vm475_vm1, %v4322_v57  ;;  %3605 = vmatmul.mubr.msk.f32.gmra.mxu1 %vm475_vm1, %v1296_v50  ;;  %v1880_v57 = vrot.slane %v4714_v13, 4  ;;  %v1704_v50 = vsel %vm873_vm3, %v1701_v53, %v1703_v10 }
  0xc3   : > { %3626 = vmatpush3.msk.msra.mxu0 %vm946_vm0, %v4611_v14  ;;  %3578 = vmatprep.mubr.msk.f32.mxu0 %vm475_vm1, %v4362_v21  ;;  %v836_v21 = vld [vmem:[#allocation2 + $0xd0] sm:$0xf] }
  0xc4   : > { %3677 = vmatprep.subr.msk.mxu0 %vm946_vm0, %v3261_v60  ;;  %3607 = vmatprep.mubr.msk.f32.mxu1 %vm475_vm1, %v4671_v11  ;;  %v1882_v14 = vrot.slane %v836_v21, 4  ;;  %v4805_v62 = vsel %vm946_vm0, %v1879_v56, %v1880_v57  ;;  %v1698_v49 = vrot.slane %v836_v21, 2 }
  0xc6   : > { %3579 = vmatmul.mubr.msk.f32.gmra.mxu0 %vm475_vm1, %v4373_v30  ;;  %3608 = vmatmul.mubr.msk.f32.gmra.mxu1 %vm475_vm1, %v4683_v38  ;;  %v1695_v30 = vrot.slane %v4697_v36, 2  ;;  %v4817_v54 = vsel %vm946_vm0, %v1880_v57, %v1882_v14  ;;  %v1699_v0 = vsel %vm873_vm3, %v1696_v39, %v1698_v49 }
  0xc7   : > { %3581 = vmatprep.mubr.msk.f32.mxu0 %vm475_vm1, %v4405_v46  ;;  %3610 = vmatprep.mubr.msk.f32.mxu1 %vm475_vm1, %v4689_v3 }
  0xc8   : > { %v1697_v24 = vsel %vm873_vm3, %v1695_v30, %v1696_v39 }
  0xca   : > { %3582 = vmatmul.mubr.msk.f32.gmra.mxu0 %vm475_vm1, %v4415_v52  ;;  %3611 = vmatmul.mubr.msk.f32.gmra.mxu1 %vm475_vm1, %v4702_v12 }
  0xcb   : > { %3584 = vmatprep.mubr.msk.f32.mxu0 %vm475_vm1, %v4450_v19  ;;  %3613 = vmatprep.mubr.msk.f32.mxu1 %vm475_vm1, %v4708_v23 }
  0xce   : > { %3585 = vmatmul.mubr.msk.f32.gmra.mxu0 %vm475_vm1, %v4461_v20  ;;  %3614 = vmatmul.mubr.msk.f32.gmra.mxu1 %vm475_vm1, %v4723_v37 }
  0xcf   : > { %3587 = vmatprep.mubr.msk.f32.mxu0 %vm475_vm1, %v4503_v45  ;;  %3616 = vmatprep.mubr.msk.f32.mxu1 %vm475_vm1, %v4729_v43 }
  0xd2   : > { %3588 = vmatmul.mubr.msk.f32.gmra.mxu0 %vm475_vm1, %v4514_v22  ;;  %3617 = vmatmul.mubr.msk.f32.gmra.mxu1 %vm475_vm1, %v4740_v6 }
  0xd3   : > { %3590 = vmatprep.mubr.msk.f32.mxu0 %vm475_vm1, %v4557_v29  ;;  %3619 = vmatprep.mubr.msk.f32.mxu1 %vm475_vm1, %v4805_v62 }
  0xd6   : > { %3591 = vmatmul.mubr.msk.f32.gmra.mxu0 %vm475_vm1, %v4568_v28  ;;  %3620 = vmatmul.mubr.msk.f32.gmra.mxu1 %vm475_vm1, %v4817_v54 }
  0xd7   : > { %3593 = vmatprep.mubr.msk.f32.mxu0 %vm475_vm1, %v1697_v24  ;;  %3622 = vmatprep.mubr.msk.f32.mxu1 %vm475_vm1, %v4822_v63 }
  0xda   : > { %3594 = vmatmul.mubr.msk.f32.gmra.mxu0 %vm475_vm1, %v1699_v0  ;;  %3623 = vmatmul.mubr.msk.f32.gmra.mxu1 %vm475_vm1, %v4832_v4 }
  0xdb   : > { %3596 = vmatprep.mubr.msk.f32.mxu0 %vm475_vm1, %v1702_v1  ;;  %3653 = vmatprep.mubr.msk.f32.mxu1 %vm475_vm1, %v4405_v46 }
  0xde   : > { %3597 = vmatmul.mubr.msk.f32.gmra.mxu0 %vm475_vm1, %v1704_v50  ;;  %3654 = vmatmul.mubr.msk.f32.vlgmr.msra.gmra.mxu1 %vm475_vm1, %v4415_v52 }
  0xdf   : > { %3627 = vmatprep.mubr.msk.f32.mxu0 %vm475_vm1, %v4375_v31  ;;  %3704 = vmatpush3.msk.msra.mxu1 %vm873_vm3, %v2625_v16  ;;  %v4870_v31 = vld [vmem:[#allocation2 + $0xf0] sm:$0xff]  ;;  %v2624_v16 = vld [vmem:[%s4916_s20 + $0x78] sm:$0xff] }
  0xe0   : > { %3656 = vmatprep.mubr.msk.f32.mxu1 %vm475_vm1, %v4450_v19  ;;  %v2243_v46 = vrot.slane %v4870_v31, 2  ;;  %v4887_v19 = vld [vmem:[#allocation2 + $0x110] sm:$0xff] }
  0xe2   : > { %3628 = vmatmul.mubr.msk.f32.vlgmr.msra.gmra.mxu0 %vm475_vm1, %v4377_v32  ;;  %3657 = vmatmul.mubr.msk.f32.gmra.mxu1 %vm475_vm1, %v4461_v20  ;;  %v4872_v32 = vld [vmem:[#allocation2 + $0xf8] sm:$0xff] }
  0xe3   : > { %3678 = vmatpush3.msk.msra.mxu0 %vm946_vm0, %v3261_v60  ;;  %3630 = vmatprep.mubr.msk.f32.mxu0 %vm475_vm1, %v4427_v5  ;;  %v2244_v52 = vrot.slane %v4872_v32, 2  ;;  %v4881_v5 = vld [vmem:[#allocation2 + $0x100] sm:$0xf] }
  0xe4   : > { %3659 = vmatprep.mubr.msk.f32.mxu1 %vm475_vm1, %v4503_v45  ;;  %v2246_v20 = vrot.slane %v4881_v5, 2  ;;  %v2249_v45 = vrot.slane %v4887_v19, 2  ;;  %v2430_v42 = vrot.slane %v4881_v5, 4 }
  0xe6   : > { %3631 = vmatmul.mubr.msk.f32.gmra.mxu0 %vm475_vm1, %v4429_v8  ;;  %3660 = vmatmul.mubr.msk.f32.gmra.mxu1 %vm475_vm1, %v4514_v22  ;;  %v4885_v8 = vld [vmem:[#allocation2 + $0x108] sm:$0xff]  ;;  %v4897_v22 = vld [vmem:[#allocation2 + $0x118] sm:$0xf] }
  0xe7   : > { %3633 = vmatprep.mubr.msk.f32.mxu0 %vm475_vm1, %v4471_v25  ;;  %3662 = vmatprep.mubr.msk.f32.mxu1 %vm475_vm1, %v4557_v29  ;;  %v2245_v25 = vsel %vm873_vm3, %v2243_v46, %v2244_v52  ;;  %v2432_v47 = vrot.slane %v4885_v8, 4 }
  0xea   : > { %3634 = vmatmul.mubr.msk.f32.gmra.mxu0 %vm475_vm1, %v4473_v26  ;;  %3663 = vmatmul.mubr.msk.f32.gmra.mxu1 %vm475_vm1, %v4568_v28  ;;  %v2248_v26 = vrot.slane %v4885_v8, 2 }
  0xeb   : > { %3636 = vmatprep.mubr.msk.f32.mxu0 %vm475_vm1, %v4528_v58  ;;  %3665 = vmatprep.mubr.msk.f32.mxu1 %vm475_vm1, %v1697_v24  ;;  %v2247_v58 = vsel %vm873_vm3, %v2244_v52, %v2246_v20 }
  0xec   : > { %v2250_v29 = vsel %vm873_vm3, %v2248_v26, %v2249_v45 }
  0xee   : > { %3637 = vmatmul.mubr.msk.f32.gmra.mxu0 %vm475_vm1, %v4530_v59  ;;  %3666 = vmatmul.mubr.msk.f32.gmra.mxu1 %vm475_vm1, %v1699_v0  ;;  %v2251_v59 = vrot.slane %v4897_v22, 2 }
  0xef   : > { %3639 = vmatprep.mubr.msk.f32.mxu0 %vm475_vm1, %v4697_v36  ;;  %3668 = vmatprep.mubr.msk.f32.mxu1 %vm475_vm1, %v1702_v1  ;;  %v2427_v36 = vrot.slane %v4870_v31, 4 }
  0xf0   : > { %v2252_v28 = vsel %vm873_vm3, %v2249_v45, %v2251_v59 }
  0xf2   : > { %3640 = vmatmul.mubr.msk.f32.gmra.mxu0 %vm475_vm1, %v4714_v13  ;;  %3669 = vmatmul.mubr.msk.f32.gmra.mxu1 %vm475_vm1, %v1704_v50 }
  0xf3   : > { %3642 = vmatprep.mubr.msk.f32.mxu0 %vm475_vm1, %v4718_v34  ;;  %3671 = vmatprep.mubr.msk.f32.mxu1 %vm475_vm1, %v2245_v25  ;;  %v2433_v34 = vrot.slane %v4887_v19, 4 }
  0xf6   : > { %3643 = vmatmul.mubr.msk.f32.gmra.mxu0 %vm475_vm1, %v4733_v61  ;;  %3672 = vmatmul.mubr.msk.f32.gmra.mxu1 %vm475_vm1, %v2247_v58  ;;  %v2435_v61 = vrot.slane %v4897_v22, 4 }
  0xf7   : > { %3645 = vmatprep.mubr.msk.f32.mxu0 %vm475_vm1, %v4870_v31  ;;  %3674 = vmatprep.mubr.msk.f32.mxu1 %vm475_vm1, %v2250_v29 }
  0xf8   : > { %v2436_v60 = vsel %vm946_vm0, %v2433_v34, %v2435_v61 }
  0xfa   : > { %3646 = vmatmul.mubr.msk.f32.gmra.mxu0 %vm475_vm1, %v4872_v32  ;;  %3675 = vmatmul.mubr.msk.f32.gmra.mxu1 %vm475_vm1, %v2252_v28 }
  0xfb   : > { %3648 = vmatprep.mubr.msk.f32.mxu0 %vm475_vm1, %v4885_v8  ;;  %3705 = vmatprep.mubr.msk.f32.mxu1 %vm2626_vm4, %v2609_v40 }
  0xfe   : > { %3649 = vmatmul.mubr.msk.f32.gmra.mxu0 %vm475_vm1, %v4887_v19  ;;  %3706 = vmatmul.mubr.msk.f32.vlgmr.msra.gmra.mxu1 %vm2626_vm4, %v2610_v41 }
  0xff   : > { %3679 = vmatprep.mubr.msk.f32.mxu0 %vm475_vm1, %v4671_v11  ;;  %3708 = vmatprep.mubr.msk.f32.mxu1 %vm2626_vm4, %v2611_v9  ;;  %v2614_v11 = vld [vmem:[%s4916_s20 + $0x28] sm:$0xff] }
 0x102   : > { %3680 = vmatmul.mubr.msk.f32.vlgmr.msra.gmra.mxu0 %vm475_vm1, %v4683_v38  ;;  %3709 = vmatmul.mubr.msk.f32.gmra.mxu1 %vm2626_vm4, %v2612_v15  ;;  %v2616_v38 = vld [vmem:[%s4916_s20 + $0x38] sm:$0xff] }
 0x103   : > { %3682 = vmatprep.mubr.msk.f32.mxu0 %vm475_vm1, %v4689_v3  ;;  %3711 = vmatprep.mubr.msk.f32.mxu1 %vm2626_vm4, %v2613_v17  ;;  %v2617_v3 = vld [vmem:[%s4916_s20 + $0x40] sm:$0xff] }
 0x106   : > { %3683 = vmatmul.mubr.msk.f32.gmra.mxu0 %vm475_vm1, %v4702_v12  ;;  %3712 = vmatmul.mubr.msk.f32.gmra.mxu1 %vm2626_vm4, %v2614_v11  ;;  %v2428_v12 = vrot.slane %v4872_v32, 4 }
 0x107   : > { %3685 = vmatprep.mubr.msk.f32.mxu0 %vm475_vm1, %v4708_v23  ;;  %3714 = vmatprep.mubr.msk.f32.mxu1 %vm2626_vm4, %v2615_v18  ;;  %v2621_v23 = vld [vmem:[%s4916_s20 + $0x60] sm:$0xff] }
 0x108   : > { %v2429_v13 = vsel %vm946_vm0, %v2427_v36, %v2428_v12 }
 0x10a   : > { %3686 = vmatmul.mubr.msk.f32.gmra.mxu0 %vm475_vm1, %v4723_v37  ;;  %3715 = vmatmul.mubr.msk.f32.gmra.mxu1 %vm2626_vm4, %v2616_v38  ;;  %v2622_v37 = vld [vmem:[%s4916_s20 + $0x68] sm:$0xff] }
 0x10b   : > { %3688 = vmatprep.mubr.msk.f32.mxu0 %vm475_vm1, %v4729_v43  ;;  %3717 = vmatprep.mubr.msk.f32.mxu1 %vm2626_vm4, %v2617_v3  ;;  %v2431_v43 = vsel %vm946_vm0, %v2428_v12, %v2430_v42 }
 0x10e   : > { %3689 = vmatmul.mubr.msk.f32.gmra.mxu0 %vm475_vm1, %v4740_v6  ;;  %3718 = vmatmul.mubr.msk.f32.gmra.mxu1 %vm2626_vm4, %v2618_v27  ;;  %v2434_v6 = vsel %vm946_vm0, %v2432_v47, %v2433_v34 }
 0x10f   : > { %3691 = vmatprep.mubr.msk.f32.mxu0 %vm475_vm1, %v4805_v62  ;;  %3720 = vmatprep.mubr.msk.f32.mxu1 %vm2626_vm4, %v2619_v35 }
 0x112   : > { %3692 = vmatmul.mubr.msk.f32.gmra.mxu0 %vm475_vm1, %v4817_v54  ;;  %3721 = vmatmul.mubr.msk.f32.gmra.mxu1 %vm2626_vm4, %v2620_v33 }
 0x113   : > { %3694 = vmatprep.mubr.msk.f32.mxu0 %vm475_vm1, %v4822_v63  ;;  %3723 = vmatprep.mubr.msk.f32.mxu1 %vm2626_vm4, %v2621_v23 }
 0x116   : > { %3695 = vmatmul.mubr.msk.f32.gmra.mxu0 %vm475_vm1, %v4832_v4  ;;  %3724 = vmatmul.mubr.msk.f32.gmra.mxu1 %vm2626_vm4, %v2622_v37 }
 0x117   : > { %3697 = vmatprep.mubr.msk.f32.mxu0 %vm475_vm1, %v2429_v13  ;;  %3726 = vmatprep.mubr.msk.f32.mxu1 %vm2626_vm4, %v2623_v2 }
 0x11a   : > { %3698 = vmatmul.mubr.msk.f32.gmra.mxu0 %vm475_vm1, %v2431_v43  ;;  %3727 = vmatmul.mubr.msk.f32.gmra.mxu1 %vm2626_vm4, %v2624_v16 }
 0x11b   : > { %3700 = vmatprep.mubr.msk.f32.mxu0 %vm475_vm1, %v2434_v6 }
 0x11e   : > { %3701 = vmatmul.mubr.msk.f32.gmra.mxu0 %vm475_vm1, %v2436_v60 }
 0x139   : > { %v3499_v56 = vpop.f32.mrf.mxu1 }
 0x13b   : > { %v1196_v57 = vpop.f32.mrf.mxu1 }
 0x13c   : > { %v3473_v21 = vpop.f32.mrf.mxu0 }
 0x13d   : > { %v1202_v30 = vadd.f32 %v3499_v56, %v3473_v21  ;;  %v3502_v39 = vpop.f32.mrf.mxu1 }
 0x13e   : > { %v1016_v14 = vpop.f32.mrf.mxu0 }
 0x13f   : > { %v1197_v44 = vadd.f32 %v1196_v57, %v1016_v14  ;;  %v1206_v7 = vpop.f32.mrf.mxu1 }
 0x140   : > { %v3476_v62 = vpop.f32.mrf.mxu0 }
 0x141   : > { %v1212_v48 = vadd.f32 %v3502_v39, %v3476_v62  ;;  %v3505_v49 = vpop.f32.mrf.mxu1 }
 0x142   : > { %v1026_v51 = vpop.f32.mrf.mxu0 }
 0x143   : > { %v1207_v53 = vadd.f32 %v1206_v7, %v1026_v51  ;;  %v1216_v24 = vpop.f32.mrf.mxu1 }
 0x144   : > { %v3479_v54 = vpop.f32.mrf.mxu0 }
 0x145   : > { %v1222_v55 = vadd.f32 %v3505_v49, %v3479_v54 }
 0x146   : > { %v1036_v63 = vpop.f32.mrf.mxu0 }
 0x147   : > { %v3508_v0 = vpop.f32.mrf.mxu1  ;;  %v1217_v10 = vadd.f32 %v1216_v24, %v1036_v63 }
 0x149   : > { %v1226_v1 = vpop.f32.mrf.mxu1 }
 0x14a   : > { %v3482_v4 = vpop.f32.mrf.mxu0 }
 0x14b   : > { %v1232_v50 = vadd.f32 %v3508_v0, %v3482_v4  ;;  %v3511_v31 = vpop.f32.mrf.mxu1 }
 0x14c   : > { %v1046_v32 = vpop.f32.mrf.mxu0 }
 0x14d   : > { %v1227_v46 = vadd.f32 %v1226_v1, %v1046_v32  ;;  %v1236_v52 = vpop.f32.mrf.mxu1 }
 0x14e   : > { %v3485_v5 = vpop.f32.mrf.mxu0 }
 0x14f   : > { %v1242_v8 = vadd.f32 %v3511_v31, %v3485_v5 }
 0x150   : > { %v1056_v19 = vpop.f32.mrf.mxu0  ;;  %v3514_v25 = vpop.f32.mrf.mxu1 }
 0x151   : > { %v1237_v20 = vadd.f32 %v1236_v52, %v1056_v19 }
 0x152   : > { %v1246_v26 = vpop.f32.mrf.mxu1 }
 0x154   : > { %v3488_v45 = vpop.f32.mrf.mxu0 }
 0x155   : > { %v1252_v22 = vadd.f32 %v3514_v25, %v3488_v45 }
 0x156   : > { %v1066_v58 = vpop.f32.mrf.mxu0  ;;  %v3517_v59 = vpop.f32.mrf.mxu1 }
 0x157   : > { %v1247_v29 = vadd.f32 %v1246_v26, %v1066_v58 }
 0x158   : > { %v1256_v28 = vpop.f32.mrf.mxu1 }
 0x159   : > { %v3491_v40 = vpop.f32.mrf.mxu0 }
 0x15a   : > { %v1262_v41 = vadd.f32 %v3517_v59, %v3491_v40  ;;  %v3520_v15 = vpop.f32.mrf.mxu1 }
 0x15b   : > { %v1076_v9 = vpop.f32.mrf.mxu0 }
 0x15c   : > { %v1257_v17 = vadd.f32 %v1256_v28, %v1076_v9  ;;  %v1266_v11 = vpop.f32.mrf.mxu1 }
 0x15e   : > { %v3494_v18 = vpop.f32.mrf.mxu0  ;;  %v3551_v3 = vpop.f32.mrf.mxu1 }
 0x15f   : > { %v1272_v38 = vadd.f32 %v3520_v15, %v3494_v18 }
 0x160   : > { %v1086_v27 = vpop.f32.mrf.mxu0  ;;  %v1596_v36 = vpop.f32.mrf.mxu1 }
 0x161   : > { %v4998_v35 = vadd.f32 %v1266_v11, %v1086_v27 }
 0x162   : > { %v3525_v12 = vpop.f32.mrf.mxu0  ;;  %v3554_v42 = vpop.f32.mrf.mxu1 }
 0x163   : > { %v1498_v33 = vadd.f32 %v3525_v12, %v1202_v30 }
 0x164   : > { %v1418_v23 = vpop.f32.mrf.mxu0  ;;  %v1606_v37 = vpop.f32.mrf.mxu1 }
 0x165   : > { %v5000_v47 = vadd.f32 %v3551_v3, %v1498_v33  ;;  %v1497_v13 = vadd.f32 %v1418_v23, %v1197_v44 }
 0x166   : > { %v3528_v34 = vpop.f32.mrf.mxu0  ;;  %v3557_v6 = vpop.f32.mrf.mxu1 }
 0x167   : > { %v5002_v2 = vadd.f32 %v1596_v36, %v1497_v13  ;;  %v1500_v43 = vadd.f32 %v3528_v34, %v1212_v48 }
 0x168   : > { %v1428_v61 = vpop.f32.mrf.mxu0  ;;  %v1616_v57 = vpop.f32.mrf.mxu1 }
 0x169   : > { %v5004_v16 = vadd.f32 %v3554_v42, %v1500_v43  ;;  %v1499_v60 = vadd.f32 %v1428_v61, %v1207_v53 }
 0x16a   : > { %v3531_v56 = vpop.f32.mrf.mxu0  ;;  %v3560_v14 = vpop.f32.mrf.mxu1 }
 0x16b   : > { %v5006_v21 = vadd.f32 %v1606_v37, %v1499_v60  ;;  %v1502_v30 = vadd.f32 %v3531_v56, %v1222_v55 }
 0x16c   : > { %v1438_v39 = vpop.f32.mrf.mxu0  ;;  %v1626_v49 = vpop.f32.mrf.mxu1 }
 0x16d   : > { %v5008_v7 = vadd.f32 %v3557_v6, %v1502_v30  ;;  %v1501_v44 = vadd.f32 %v1438_v39, %v1217_v10 }
 0x16e   : > { %v3534_v62 = vpop.f32.mrf.mxu0  ;;  %v3563_v54 = vpop.f32.mrf.mxu1 }
 0x16f   : > { %v5010_v51 = vadd.f32 %v1616_v57, %v1501_v44  ;;  %v1504_v48 = vadd.f32 %v3534_v62, %v1232_v50 }
 0x170   : > { %v1448_v24 = vpop.f32.mrf.mxu0  ;;  %v1636_v1 = vpop.f32.mrf.mxu1 }
 0x171   : > { %v5012_v63 = vadd.f32 %v3560_v14, %v1504_v48  ;;  %v1503_v53 = vadd.f32 %v1448_v24, %v1227_v46 }
 0x172   : > { %v3537_v0 = vpop.f32.mrf.mxu0  ;;  %v3566_v32 = vpop.f32.mrf.mxu1 }
 0x173   : > { %v5014_v4 = vadd.f32 %v1626_v49, %v1503_v53  ;;  %v1506_v55 = vadd.f32 %v3537_v0, %v1242_v8 }
 0x174   : > { %v1458_v31 = vpop.f32.mrf.mxu0  ;;  %v1646_v19 = vpop.f32.mrf.mxu1 }
 0x175   : > { %v5016_v52 = vadd.f32 %v3563_v54, %v1506_v55  ;;  %v1505_v10 = vadd.f32 %v1458_v31, %v1237_v20 }
 0x176   : > { %v3540_v5 = vpop.f32.mrf.mxu0  ;;  %v3569_v45 = vpop.f32.mrf.mxu1 }
 0x177   : > { %v5018_v25 = vadd.f32 %v1636_v1, %v1505_v10  ;;  %v1508_v50 = vadd.f32 %v3540_v5, %v1252_v22 }
 0x178   : > { %v1468_v26 = vpop.f32.mrf.mxu0  ;;  %v1656_v28 = vpop.f32.mrf.mxu1 }
 0x179   : > { %v5020_v58 = vadd.f32 %v3566_v32, %v1508_v50  ;;  %v1507_v46 = vadd.f32 %v1468_v26, %v1247_v29 }
 0x17a   : > { %v3543_v59 = vpop.f32.mrf.mxu0  ;;  %v3572_v15 = vpop.f32.mrf.mxu1 }
 0x17b   : > { %v5022_v40 = vadd.f32 %v1646_v19, %v1507_v46  ;;  %v1510_v8 = vadd.f32 %v3543_v59, %v1262_v41 }
 0x17c   : > { %v1478_v9 = vpop.f32.mrf.mxu0  ;;  %v1666_v3 = vpop.f32.mrf.mxu1 }
 0x17d   : > { %v5024_v11 = vadd.f32 %v3569_v45, %v1510_v8  ;;  %v1509_v20 = vadd.f32 %v1478_v9, %v1257_v17 }
 0x17e   : > { %v3546_v18 = vpop.f32.mrf.mxu0  ;;  %v5028_v12 = vpop.f32.mrf.mxu1 }
 0x17f   : > { %v5026_v27 = vadd.f32 %v1656_v28, %v1509_v20  ;;  %v1512_v22 = vadd.f32 %v3546_v18, %v1272_v38 }
 0x180   : > { %v1488_v36 = vpop.f32.mrf.mxu0  ;;  %v5033_v42 = vpop.f32.mrf.mxu1 }
 0x181   : > { %5300 = vst [vmem:[#allocation13_spill] sm:$0xff] %v5026_v27  ;;  %v5030_v33 = vadd.f32 %v3572_v15, %v1512_v22  ;;  %v1511_v29 = vadd.f32 %v1488_v36, %v4998_v35 }
 0x182   : > { %v3577_v23 = vpop.f32.mrf.mxu0  ;;  %v5037_v34 = vpop.f32.mrf.mxu1 }
 0x183   : > { %5301 = vst [vmem:[#allocation14_spill] sm:$0xff] %v5030_v33  ;;  %v5035_v41 = vadd.f32 %v1666_v3, %v1511_v29 }
 0x184   : > { %v1782_v13 = vpop.f32.mrf.mxu0  ;;  %v5039_v37 = vpop.f32.mrf.mxu1 }
 0x185   : > { %5302 = vst [vmem:[#allocation15_spill] sm:$0xff] %v5035_v41 }
 0x186   : > { %v3580_v17 = vpop.f32.mrf.mxu0  ;;  %v5041_v38 = vpop.f32.mrf.mxu1 }
 0x188   : > { %v1792_v43 = vpop.f32.mrf.mxu0  ;;  %v5043_v6 = vpop.f32.mrf.mxu1 }
 0x18a   : > { %v3583_v61 = vpop.f32.mrf.mxu0  ;;  %v5045_v56 = vpop.f32.mrf.mxu1 }
 0x18c   : > { %v1802_v60 = vpop.f32.mrf.mxu0  ;;  %v5049_v57 = vpop.f32.mrf.mxu1 }
 0x18e   : > { %v5047_v35 = vpop.f32.mrf.mxu0  ;;  %v5053_v39 = vpop.f32.mrf.mxu1 }
 0x190   : > { %v5051_v30 = vpop.f32.mrf.mxu0  ;;  %v5057_v44 = vpop.f32.mrf.mxu1 }
 0x192   : > { %v5055_v14 = vpop.f32.mrf.mxu0  ;;  %v5061_v49 = vpop.f32.mrf.mxu1 }
 0x194   : > { %v5059_v62 = vpop.f32.mrf.mxu0  ;;  %v5065_v24 = vpop.f32.mrf.mxu1 }
 0x195   : > { %5303 = vst [vmem:[#allocation16_spill] sm:$0xff] %v5065_v24 }
 0x196   : > { %v5063_v48 = vpop.f32.mrf.mxu0  ;;  %v5069_v53 = vpop.f32.mrf.mxu1 }
 0x197   : > { %5304 = vst [vmem:[#allocation17_spill] sm:$0xff] %v5069_v53  ;;  %v1862_v53 = vadd.f32 %v3577_v23, %v5000_v47  ;;  %v1863_v23 = vadd.f32 %v1792_v43, %v5006_v21 }
 0x198   : > { %v5067_v54 = vpop.f32.mrf.mxu0  ;;  %v5073_v1 = vpop.f32.mrf.mxu1 }
 0x199   : > { %5305 = vst [vmem:[#allocation18_spill] sm:$0xff] %v5073_v1 }
 0x19a   : > { %v5071_v0 = vpop.f32.mrf.mxu0  ;;  %v5077_v31 = vpop.f32.mrf.mxu1 }
 0x19b   : > { %5307 = vst [vmem:[#allocation20_spill] sm:$0xff] %v5077_v31 }
 0x19c   : > { %v5075_v55 = vpop.f32.mrf.mxu0  ;;  %v5081_v10 = vpop.f32.mrf.mxu1 }
 0x19d   : > { %5306 = vst [vmem:[#allocation19_spill] sm:$0xff] %v5075_v55  ;;  %5309 = vst [vmem:[#allocation22_spill] sm:$0xff] %v5081_v10 }
 0x19e   : > { %v5079_v32 = vpop.f32.mrf.mxu0  ;;  %v3655_v19 = vpop.f32.mrf.mxu1 }
 0x19f   : > { %5308 = vst [vmem:[#allocation21_spill] sm:$0xff] %v5079_v32 }
 0x1a0   : > { %v5083_v5 = vpop.f32.mrf.mxu0  ;;  %v2330_v26 = vpop.f32.mrf.mxu1 }
 0x1a1   : > { %5310 = vst [vmem:[#allocation23_spill] sm:$0xff] %v5083_v5 }
 0x1a2   : > { %v3629_v50 = vpop.f32.mrf.mxu0  ;;  %v3658_v46 = vpop.f32.mrf.mxu1 }
 0x1a4   : > { %v2144_v45 = vpop.f32.mrf.mxu0  ;;  %v5085_v28 = vpop.f32.mrf.mxu1 }
 0x1a6   : > { %v3632_v59 = vpop.f32.mrf.mxu0  ;;  %v5087_v9 = vpop.f32.mrf.mxu1 }
 0x1a8   : > { %v2154_v8 = vpop.f32.mrf.mxu0  ;;  %v5089_v20 = vpop.f32.mrf.mxu1 }
 0x1aa   : > { %v3635_v15 = vpop.f32.mrf.mxu0  ;;  %v5091_v3 = vpop.f32.mrf.mxu1 }
 0x1ac   : > { %v2164_v18 = vpop.f32.mrf.mxu0  ;;  %v5095_v36 = vpop.f32.mrf.mxu1 }
 0x1ad   : > { %5311 = vst [vmem:[#allocation24_spill] sm:$0xff] %v5095_v36 }
 0x1ae   : > { %v5093_v22 = vpop.f32.mrf.mxu0  ;;  %v5099_v10 = vpop.f32.mrf.mxu1 }
 0x1af   : > { %5312 = vst [vmem:[#allocation25_spill] sm:$0xff] %v5099_v10  ;;  %v1861_v10 = vadd.f32 %v1782_v13, %v5002_v2 }
 0x1b0   : > { %v5097_v29 = vpop.f32.mrf.mxu0  ;;  %v5103_v5 = vpop.f32.mrf.mxu1 }
 0x1b1   : > { %5313 = vst [vmem:[#allocation26_spill] sm:$0xff] %v5103_v5  ;;  %v2046_v5 = vadd.f32 %v5028_v12, %v1862_v53  ;;  %v2045_v47 = vadd.f32 %v5033_v42, %v1861_v10 }
 0x1b2   : > { %v5101_v31 = vpop.f32.mrf.mxu0  ;;  %v5107_v1 = vpop.f32.mrf.mxu1 }
 0x1b3   : > { %5315 = vst [vmem:[#allocation28_spill] sm:$0xff] %v5107_v1  ;;  %v1864_v1 = vadd.f32 %v3580_v17, %v5004_v16  ;;  %v2223_v12 = vadd.f32 %v2144_v45, %v2045_v47  ;;  %v1865_v16 = vadd.f32 %v1802_v60, %v5010_v51  ;;  %v1867_v51 = vadd.f32 %v5051_v30, %v5014_v4 }
 0x1b4   : > { %v5105_v41 = vpop.f32.mrf.mxu0  ;;  %v5111_v33 = vpop.f32.mrf.mxu1 }
 0x1b5   : > { %5314 = vst [vmem:[#allocation27_spill] sm:$0xff] %v5105_v41  ;;  %5317 = vst [vmem:[#allocation30_spill] sm:$0xff] %v5111_v33  ;;  %v2224_v33 = vadd.f32 %v3629_v50, %v2046_v5  ;;  %v2409_v5 = vadd.f32 %v2330_v26, %v2223_v12 }
 0x1b6   : > { %v5109_v32 = vpop.f32.mrf.mxu0  ;;  %v5116_v27 = vpop.f32.mrf.mxu1 }
 0x1b7   : > { %5316 = vst [vmem:[#allocation29_spill] sm:$0xff] %v5109_v32  ;;  %5318 = vst [vmem:[#allocation31_spill] sm:$0xff] %v5116_v27  ;;  %v1866_v27 = vadd.f32 %v3583_v61, %v5008_v7  ;;  %v2410_v42 = vadd.f32 %v3655_v19, %v2224_v33  ;;  %v1868_v7 = vadd.f32 %v5047_v35, %v5012_v63  ;;  %v5150_v33 = vld [vmem:[%s5279_s8] ss:$0 sm:$0xff] }
 0x1b8   : > { %v5114_v55 = vpop.f32.mrf.mxu0  ;;  %v5121_v36 = vpop.f32.mrf.mxu1 }
 0x1b9   : > { %5319 = vst [vmem:[#allocation32_spill] sm:$0xff] %v5121_v36  ;;  %v2048_v36 = vadd.f32 %v5037_v34, %v1864_v1  ;;  %v2050_v21 = vadd.f32 %v5041_v38, %v1866_v27  ;;  %v2049_v1 = vadd.f32 %v5043_v6, %v1865_v16  ;;  %v1870_v6 = vadd.f32 %v5055_v14, %v5016_v52 }
 0x1ba   : > { %v5119_v24 = vpop.f32.mrf.mxu0  ;;  %v5127_v32 = vpop.f32.mrf.mxu1  ;;  %v1869_v52 = vadd.f32 %v5059_v62, %v5018_v25 }
 0x1bb   : > { %5320 = vst [vmem:[#allocation33_spill] sm:$0xff] %v5127_v32  ;;  %v2047_v32 = vadd.f32 %v5039_v37, %v1863_v23  ;;  %v2226_v10 = vadd.f32 %v3632_v59, %v2048_v36  ;;  %v2228_v60 = vadd.f32 %v3635_v15, %v2050_v21  ;;  %v2227_v19 = vadd.f32 %v2164_v18, %v2049_v1 }
 0x1bc   : > { %v5125_v41 = vpop.f32.mrf.mxu0  ;;  %v5134_v13 = vpop.f32.mrf.mxu1  ;;  %v2054_v12 = vadd.f32 %v5053_v39, %v1870_v6  ;;  %v2053_v21 = vadd.f32 %v5057_v44, %v1869_v52  ;;  %v1871_v39 = vadd.f32 %v5067_v54, %v5022_v40  ;;  %v1874_v44 = vadd.f32 %v5071_v0, %v5024_v11  ;;  %v5321_v40 = vld [vmem:[#allocation24_spill] sm:$0xff]  ;;  %v5326_v11 = vld [vmem:[#allocation25_spill] sm:$0xff] }
 0x1bd   : > { %v2225_v50 = vadd.f32 %v2154_v8, %v2047_v32  ;;  %v2412_v63 = vadd.f32 %v3658_v46, %v2226_v10  ;;  %v2052_v32 = vadd.f32 %v5045_v56, %v1868_v7  ;;  %v2051_v56 = vadd.f32 %v5049_v57, %v1867_v51 }
 0x1be   : > { %v5132_v2 = vpop.f32.mrf.mxu0  ;;  %v3707_v53 = vpop.f32.mrf.mxu1  ;;  %v2414_v14 = vadd.f32 %v5087_v9, %v2228_v60  ;;  %v1872_v57 = vadd.f32 %v5063_v48, %v5020_v58  ;;  %v2413_v16 = vadd.f32 %v5089_v20, %v2227_v19  ;;  %v2232_v48 = vadd.f32 %v5101_v31, %v2054_v12  ;;  %v5327_v6 = vld [vmem:[#allocation29_spill] sm:$0xff] }
 0x1bf   : > { %v2411_v26 = vadd.f32 %v5085_v28, %v2225_v50  ;;  %v2230_v46 = vadd.f32 %v5093_v22, %v2052_v32  ;;  %v2229_v25 = vadd.f32 %v5097_v29, %v2051_v56  ;;  %v5328_v56 = vld [vmem:[#allocation17_spill] sm:$0xff] }
 0x1c0   : > { %v5138_v17 = vpop.f32.mrf.mxu0  ;;  %v2744_v61 = vpop.f32.mrf.mxu1  ;;  %v2056_v50 = vadd.f32 %v5061_v49, %v1872_v57  ;;  %v5324_v49 = vld [vmem:[#allocation13_spill] sm:$0xff]  ;;  %v2418_v0 = vadd.f32 %v5326_v11, %v2232_v48  ;;  %v2058_v52 = vadd.f32 %v5328_v56, %v1874_v44  ;;  %v5340_v11 = vld [vmem:[#allocation32_spill] sm:$0xff] }
 0x1c1   : > { %v2416_v58 = vadd.f32 %v5091_v3, %v2230_v46  ;;  %v2415_v54 = vadd.f32 %v5321_v40, %v2229_v25  ;;  %v5322_v3 = vld [vmem:[#allocation27_spill] sm:$0xff]  ;;  %v5330_v46 = vld [vmem:[#allocation21_spill] sm:$0xff] }
 0x1c2   : > { %v3681_v43 = vpop.f32.mrf.mxu0  ;;  %v3710_v37 = vpop.f32.mrf.mxu1  ;;  %v2234_v19 = vadd.f32 %v5327_v6, %v2056_v50 }
 0x1c3   : > { %v2594_v34 = vadd.f32 %v3681_v43, %v2410_v42 }
 0x1c4   : > { %v2514_v27 = vpop.f32.mrf.mxu0  ;;  %v2754_v30 = vpop.f32.mrf.mxu1 }
 0x1c5   : > { %v2824_v38 = vadd.f32 %v3707_v53, %v2594_v34  ;;  %v2593_v35 = vadd.f32 %v2514_v27, %v2409_v5  ;;  %v2231_v34 = vadd.f32 %v5322_v3, %v2053_v21 }
 0x1c6   : > { %v3684_v4 = vpop.f32.mrf.mxu0  ;;  %v3713_v15 = vpop.f32.mrf.mxu1 }
 0x1c7   : > { %v2847_v45 = vadd.f32 %v5150_v33, %v2824_v38  ;;  %v2823_v59 = vadd.f32 %v2744_v61, %v2593_v35  ;;  %v2596_v8 = vadd.f32 %v3684_v4, %v2412_v63  ;;  %v5323_v63 = vld [vmem:[#allocation16_spill] sm:$0xff]  ;;  %v5325_v35 = vld [vmem:[#allocation19_spill] sm:$0xff] }
 0x1c8   : > { %v2524_v28 = vpop.f32.mrf.mxu0  ;;  %v2764_v9 = vpop.f32.mrf.mxu1  ;;  %v2055_v38 = vadd.f32 %v5323_v63, %v1871_v39  ;;  %v1873_v32 = vadd.f32 %v5325_v35, %v5324_v49  ;;  %v2236_v39 = vadd.f32 %v5119_v24, %v2058_v52 }
 0x1c9   : > { %v2863_v18 = vmax.f32 %v2847_v45, 0.0  ;;  %v2846_v36 = vadd.f32 %v5150_v33, %v2823_v59  ;;  %v2826_v47 = vadd.f32 %v3710_v37, %v2596_v8  ;;  %v2595_v23 = vadd.f32 %v2524_v28, %v2411_v26 }
 0x1ca   : > { %v3687_v62 = vpop.f32.mrf.mxu0  ;;  %v3716_v29 = vpop.f32.mrf.mxu1 }
 0x1cb   : > { %2880 = vst.msk [vmem:[%s5162_s4 + $0x8] sm:$0xff] %vm2878_vm5, %v2863_v18  ;;  %v2862_v22 = vmax.f32 %v2846_v36, 0.0  ;;  %v2849_v53 = vadd.f32 %v5150_v33, %v2826_v47  ;;  %v2825_v42 = vadd.f32 %v2754_v30, %v2595_v23  ;;  %v2598_v10 = vadd.f32 %v3687_v62, %v2414_v14  ;;  %v5329_v14 = vld [vmem:[#allocation14_spill] sm:$0xff] }
 0x1cc   : > { %v2534_v20 = vpop.f32.mrf.mxu0  ;;  %v2774_v1 = vpop.f32.mrf.mxu1  ;;  %v1876_v28 = vadd.f32 %v5330_v46, %v5329_v14  ;;  %v2233_v36 = vadd.f32 %v5114_v55, %v2055_v38  ;;  %v5332_v62 = vld [vmem:[#allocation18_spill] sm:$0xff] }
 0x1cd   : > { %2879 = vst.msk [vmem:[%s5162_s4] sm:$0xff] %vm2878_vm5, %v2862_v22  ;;  %v2865_v7 = vmax.f32 %v2849_v53, 0.0  ;;  %v2848_v43 = vadd.f32 %v5150_v33, %v2825_v42  ;;  %v2828_v61 = vadd.f32 %v3713_v15, %v2598_v10  ;;  %v2597_v5 = vadd.f32 %v2534_v20, %v2413_v16  ;;  %v5331_v15 = vld [vmem:[#allocation26_spill] sm:$0xff]  ;;  %v5333_v22 = vld [vmem:[#allocation15_spill] sm:$0xff]  ;;  %v5335_v10 = vld [vmem:[#allocation28_spill] sm:$0xff] }
 0x1ce   : > { %v3690_v31 = vpop.f32.mrf.mxu0  ;;  %v3719_v30 = vpop.f32.mrf.mxu1  ;;  %v2417_v18 = vadd.f32 %v5331_v15, %v2231_v34  ;;  %v5334_v53 = vld [vmem:[#allocation23_spill] sm:$0xff]  ;;  %v2420_v21 = vadd.f32 %v5335_v10, %v2234_v19 }
 0x1cf   : > { %2882 = vst.msk [vmem:[%s5162_s4 + $0x18] sm:$0xff] %vm2878_vm5, %v2865_v7  ;;  %v2864_v51 = vmax.f32 %v2848_v43, 0.0  ;;  %v2851_v60 = vadd.f32 %v5150_v33, %v2828_v61  ;;  %v2827_v27 = vadd.f32 %v2764_v9, %v2597_v5  ;;  %v2600_v37 = vadd.f32 %v3690_v31, %v2416_v58  ;;  %v5336_v43 = vld [vmem:[#allocation20_spill] sm:$0xff]  ;;  %v5337_v5 = vld [vmem:[#allocation30_spill] sm:$0xff] }
 0x1d0   : > { %v2544_v4 = vpop.f32.mrf.mxu0  ;;  %v2784_v23 = vpop.f32.mrf.mxu1  ;;  %v2057_v9 = vadd.f32 %v5332_v62, %v1873_v32  ;;  %v1875_v42 = vadd.f32 %v5334_v53, %v5333_v22  ;;  %v2060_v61 = vadd.f32 %v5336_v43, %v1876_v28  ;;  %v2419_v50 = vadd.f32 %v5337_v5, %v2233_v36 }
 0x1d1   : > { %2881 = vst.msk [vmem:[%s5162_s4 + $0x10] sm:$0xff] %vm2878_vm5, %v2864_v51  ;;  %v2867_v26 = vmax.f32 %v2851_v60, 0.0  ;;  %v2850_v45 = vadd.f32 %v5150_v33, %v2827_v27  ;;  %v2830_v59 = vadd.f32 %v3716_v29, %v2600_v37  ;;  %v2599_v8 = vadd.f32 %v2544_v4, %v2415_v54  ;;  %v5339_v60 = vld [vmem:[#allocation31_spill] sm:$0xff] }
 0x1d2   : > { %v3693_v47 = vpop.f32.mrf.mxu0  ;;  %v3722_v58 = vpop.f32.mrf.mxu1  ;;  %v2235_v44 = vadd.f32 %v5125_v41, %v2057_v9  ;;  %v2422_v27 = vadd.f32 %v5339_v60, %v2236_v39  ;;  %v2238_v37 = vadd.f32 %v5132_v2, %v2060_v61 }
 0x1d3   : > { %2884 = vst.msk [vmem:[%s5162_s4 + $0x28] sm:$0xff] %vm2878_vm5, %v2867_v26  ;;  %v2866_v12 = vmax.f32 %v2850_v45, 0.0  ;;  %v2853_v57 = vadd.f32 %v5150_v33, %v2830_v59  ;;  %v2829_v16 = vadd.f32 %v2774_v1, %v2599_v8  ;;  %v2602_v25 = vadd.f32 %v3693_v47, %v2418_v0  ;;  %v5338_v1 = vld [vmem:[#allocation22_spill] sm:$0xff]  ;;  %v5341_v59 = vld [vmem:[#allocation33_spill] sm:$0xff] }
 0x1d4   : > { %v2554_v55 = vpop.f32.mrf.mxu0  ;;  %v2794_v54 = vpop.f32.mrf.mxu1  ;;  %v2059_v51 = vadd.f32 %v5338_v1, %v1875_v42  ;;  %v2421_v0 = vadd.f32 %v5340_v11, %v2235_v44  ;;  %v2424_v8 = vadd.f32 %v5341_v59, %v2238_v37 }
 0x1d5   : > { %2883 = vst.msk [vmem:[%s5162_s4 + $0x20] sm:$0xff] %vm2878_vm5, %v2866_v12  ;;  %v2869_v48 = vmax.f32 %v2853_v57, 0.0  ;;  %v2852_v20 = vadd.f32 %v5150_v33, %v2829_v16  ;;  %v2832_v29 = vadd.f32 %v3719_v30, %v2602_v25  ;;  %v2601_v7 = vadd.f32 %v2554_v55, %v2417_v18 }
 0x1d6   : > { %v3696_v40 = vpop.f32.mrf.mxu0  ;;  %v3725_v38 = vpop.f32.mrf.mxu1  ;;  %v2237_v6 = vadd.f32 %v5138_v17, %v2059_v51 }
 0x1d7   : > { %2886 = vst.msk [vmem:[%s5162_s4 + $0x38] sm:$0xff] %vm2878_vm5, %v2869_v48  ;;  %v2868_v24 = vmax.f32 %v2852_v20, 0.0  ;;  %v2855_v3 = vadd.f32 %v5150_v33, %v2832_v29  ;;  %v2831_v34 = vadd.f32 %v2784_v23, %v2601_v7  ;;  %v2604_v31 = vadd.f32 %v3696_v40, %v2420_v21 }
 0x1d8   : > { %v2564_v63 = vpop.f32.mrf.mxu0  ;;  %v2804_v4 = vpop.f32.mrf.mxu1  ;;  %v2423_v28 = vadd.f32 %v5134_v13, %v2237_v6 }
 0x1d9   : > { %2885 = vst.msk [vmem:[%s5162_s4 + $0x30] sm:$0xff] %vm2878_vm5, %v2868_v24  ;;  %v2871_v41 = vmax.f32 %v2855_v3, 0.0  ;;  %v2854_v49 = vadd.f32 %v5150_v33, %v2831_v34  ;;  %v2834_v35 = vadd.f32 %v3722_v58, %v2604_v31  ;;  %v2603_v32 = vadd.f32 %v2564_v63, %v2419_v50 }
 0x1da   : > { %v3699_v19 = vpop.f32.mrf.mxu0  ;;  %v3728_v18 = vpop.f32.mrf.mxu1 }
 0x1db   : > { %2888 = vst.msk [vmem:[%s5162_s4 + $0x48] sm:$0xff] %vm2878_vm5, %v2871_v41  ;;  %v2870_v2 = vmax.f32 %v2854_v49, 0.0  ;;  %v2857_v30 = vadd.f32 %v5150_v33, %v2834_v35  ;;  %v2833_v26 = vadd.f32 %v2794_v54, %v2603_v32  ;;  %v2606_v45 = vadd.f32 %v3699_v19, %v2422_v27 }
 0x1dc   : > { %v2574_v56 = vpop.f32.mrf.mxu0  ;;  %v2814_v9 = vpop.f32.mrf.mxu1 }
 0x1dd   : > { %2887 = vst.msk [vmem:[%s5162_s4 + $0x40] sm:$0xff] %vm2878_vm5, %v2870_v2  ;;  %v2873_v52 = vmax.f32 %v2857_v30, 0.0  ;;  %v2856_v14 = vadd.f32 %v5150_v33, %v2833_v26  ;;  %v2836_v17 = vadd.f32 %v3725_v38, %v2606_v45  ;;  %v2605_v46 = vadd.f32 %v2574_v56, %v2421_v0 }
 0x1de   : > { %v3702_v15 = vpop.f32.mrf.mxu0 }
 0x1df   : > { %2890 = vst.msk [vmem:[%s5162_s4 + $0x58] sm:$0xff] %vm2878_vm5, %v2873_v52  ;;  %v2872_v36 = vmax.f32 %v2856_v14, 0.0  ;;  %v2859_v47 = vadd.f32 %v5150_v33, %v2836_v17  ;;  %v2835_v23 = vadd.f32 %v2804_v4, %v2605_v46  ;;  %v2608_v12 = vadd.f32 %v3702_v15, %v2424_v8 }
 0x1e0   : > { %v2584_v57 = vpop.f32.mrf.mxu0 }
 0x1e1   : > { %2889 = vst.msk [vmem:[%s5162_s4 + $0x50] sm:$0xff] %vm2878_vm5, %v2872_v36  ;;  %v2875_v16 = vmax.f32 %v2859_v47, 0.0  ;;  %v2858_v25 = vadd.f32 %v5150_v33, %v2835_v23  ;;  %v2838_v62 = vadd.f32 %v3728_v18, %v2608_v12  ;;  %v2607_v13 = vadd.f32 %v2584_v57, %v2423_v28 }
 0x1e3   : > { %2892 = vst.msk [vmem:[%s5162_s4 + $0x68] sm:$0xff] %vm2878_vm5, %v2875_v16  ;;  %v2874_v22 = vmax.f32 %v2858_v25, 0.0  ;;  %v2861_v53 = vadd.f32 %v5150_v33, %v2838_v62  ;;  %v2837_v42 = vadd.f32 %v2814_v9, %v2607_v13 }
 0x1e5   : > { %2891 = vst.msk [vmem:[%s5162_s4 + $0x60] sm:$0xff] %vm2878_vm5, %v2874_v22  ;;  %v2877_v10 = vmax.f32 %v2861_v53, 0.0  ;;  %v2860_v21 = vadd.f32 %v5150_v33, %v2837_v42 }
 0x1e7   : > { %2894 = vst.msk [vmem:[%s5162_s4 + $0x78] sm:$0xff] %vm2878_vm5, %v2877_v10  ;;  %v2876_v39 = vmax.f32 %v2860_v21, 0.0 }
 0x1e9   : > { %2893 = vst.msk [vmem:[%s5162_s4 + $0x70] sm:$0xff] %vm2878_vm5, %v2876_v39 }
 0x1ea PF: > { %s22_s13 = sadd.s32 1, %s3921_s13   ;;  %s5342_s30 = smov %s3913_s11 }
 0x1eb   : > { %p19_p4 = scmp.ge.s32.totalorder %s22_s13, 6   ;;  %s5343_s10 = smov %s3917_s12 }
 0x1ec   : > { %s5344_s11 = smov %s5347_s21  ;;  %s5345_s12 = smov %s5351_s25 }
 0x1ed   :  { %21 = sbr.rel (!%p19_p4) target bundleno = 11 (0xb), region = 149 }
 0x1f2   :  { %2927 = vsyncpa [#allocation4], 1 }
 0x1f3   :  { %2929 = vsyncpa [#allocation4 + $0x1], 1 }
 0x1f4   :  { %2930 = vsyncpa [#allocation6], 1 }
 0x1f5   :  { %2931 = vsyncpa [#allocation9], 1 }

</bundles_post_ra>
